<compile_context>
chip_gen: v7x
topology: tpu7x:2x2x1
jax: 0.10.0
libtpu: 0.0.40
codegen_flags: <defaults>
</compile_context>

<pallas_src>
import jax
import jax.numpy as jnp
from jax import lax
from jax.experimental import pallas as pl
from jax.experimental.pallas import tpu as pltpu

_EPS = 1e-5
_LANE = 128
_SUBLANE = 8


def _round_up(v, m):
    return -(-v // m) * m


def _tpu_caps():
    """Returns (depthwise compute dtype, VMEM capacity bytes) for this TPU."""
    kind = ""
    try:
        kind = jax.devices()[0].device_kind.lower()
    except Exception:
        pass
    # v5e and older have no bf16 VALU -> keep the depthwise FMA chain in f32 there.
    old_vpu = any(tag in kind for tag in ("v2", "v3", "v4", "v5"))
    dw_dtype = jnp.float32 if old_vpu else jnp.bfloat16
    vmem = 0
    try:
        vmem = int(getattr(pltpu.get_tpu_info(), "vmem_capacity_bytes", 0))
    except Exception:
        vmem = 0
    if vmem <= 0:
        vmem = 64 * 1024 * 1024          # conservative (v7x-sized) fallback
    return dw_dtype, vmem


def _pick_tile_ho(ho, wo_pad, cin, cout, in_item, dw_item, out_item,
                  budget_bytes, prefer_multi):
    """Largest divisor of Ho whose per-step VMEM footprint fits the budget."""
    cin_p = _round_up(cin, _LANE)
    cout_p = _round_up(cout, _LANE)

    def step_bytes(t):
        rows = t * wo_pad
        act = rows * cin_p * (in_item + dw_item + 2)    # taps + acc + bf16 h1
        res = rows * cout_p * (4 + 2 * out_item)        # f32 matmul + 2x out block
        return act + res

    divisors = [t for t in range(1, ho + 1) if ho % t == 0]
    fitting = [t for t in divisors if step_bytes(t) <= budget_bytes] or [1]
    if prefer_multi:                                    # keep >=2 row tiles (v7x: 2 TCs)
        multi = [t for t in fitting if ho // t >= 2]
        if multi:
            return max(multi)
    return max(fitting)


def _make_kernel(*, stride, hq, wq, tile_ho, wo_pad, cin, cout):
    tile_p = tile_ho * wo_pad

    def kernel(x_ref, wdw_ref, b1_ref, wpw_ref, b2_ref, out_ref):
        # x_ref  : (s*Hq, s*Wq, Cin) full padded, space-to-depth'd plane (resident over t)
        # wdw_ref: (9, Cin)          depthwise weights, BN1 scale folded (bf16 or f32)
        # b1_ref : (1, Cin)          folded BN1 shift (same dtype as wdw)
        # wpw_ref: (Cin, Cout)       pointwise weights, BN2 scale folded (MXU dtype)
        # b2_ref : (1, Cout)         folded BN2 shift (f32)
        # out_ref: (tile_ho, wo_pad, Cout)
        t = pl.program_id(1)
        row_base = t * tile_ho

        # ---- depthwise 3x3: unrolled 9-tap FMA chain on the VPU -------------
        # Every tap is a unit-stride window thanks to the wrapper de-interleave.
        acc = None
        for k in range(9):
            di, dj = divmod(k, 3)
            r0 = (di % stride) * hq + (di // stride) + row_base
            c0 = (dj % stride) * wq + (dj // stride)
            tap = x_ref[pl.ds(r0, tile_ho), pl.ds(c0, wo_pad), :]
            term = tap.astype(wdw_ref.dtype) * wdw_ref[pl.ds(k, 1), :]
            acc = term if acc is None else acc + term

        # ---- BN1 (scale folded) + ReLU; reshape is free since wo_pad % 8 == 0
        h1 = jnp.maximum(acc + b1_ref[...], 0.0)
        h1 = h1.reshape(tile_p, cin).astype(wpw_ref.dtype)

        # ---- pointwise 1x1 conv == channel matmul on the MXU (f32 acc) ------
        pw = jnp.dot(h1, wpw_ref[...], preferred_element_type=jnp.float32)

        # ---- BN2 (scale folded) + ReLU --------------------------------------
        pw = jnp.maximum(pw + b2_ref[...], 0.0)
        out_ref[...] = pw.reshape(tile_ho, wo_pad, cout).astype(out_ref.dtype)

    return kernel


def depthwise_separable_conv(x_nchw, w_dw, w_pw, bn1, bn2, *, stride,
                             in_dtype=jnp.bfloat16, mxu_dtype=jnp.bfloat16,
                             out_dtype=None):
    """Forward pass of DepthwiseSeparableConv (eval-mode BN).

    x_nchw: (N, Cin, H, W) float32
    w_dw  : (Cin, 1, 3, 3)    depthwise conv weight (torch layout)
    w_pw  : (Cout, Cin, 1, 1) pointwise conv weight (torch layout)
    bn1   : (gamma, beta, running_mean, running_var) each (Cin,)
    bn2   : same, each (Cout,)
    returns (N, Cout, Ho, Wo) in x_nchw.dtype
    """
    N, Cin, H, W = x_nchw.shape
    Cout = w_pw.shape[0]
    s = int(stride)
    assert s in (1, 2), "MobileNet depthwise-separable blocks use stride 1 or 2"
    Ho = (H - 1) // s + 1
    Wo = (W - 1) // s + 1
    wo_pad = _round_up(Wo, _SUBLANE)     # sublane-dense tile & free in-kernel reshape
    hq = Ho + 2 // s                     # rows per parity plane (incl. halo)
    wq = wo_pad + 2 // s                 # cols per parity plane (incl. halo)
    hr, wc = s * hq, s * wq

    dw_dtype, vmem_cap = _tpu_caps()
    if out_dtype is None:
        out_dtype = x_nchw.dtype
    in_item = jnp.dtype(in_dtype).itemsize
    dw_item = jnp.dtype(dw_dtype).itemsize
    out_item = jnp.dtype(out_dtype).itemsize

    # Per-chip VMEM budget: the resident (double-buffered) input plane is paid
    # up-front; the rest goes to the per-step compute/output tile.
    plane_bytes = hr * _round_up(wc, _SUBLANE) * _round_up(Cin, _LANE) * in_item
    budget = int(vmem_cap * 0.45) - 2 * plane_bytes
    tile_ho = _pick_tile_ho(Ho, wo_pad, Cin, Cout, in_item, dw_item, out_item,
                            max(budget, 1), prefer_multi=(N < 2))
    T = Ho // tile_ho

    # ---- single layout-only pass over the activation (fused by XLA) --------
    # NCHW -> NHWC, cast to bf16, pad, space-to-depth de-interleave by stride.
    x = jnp.transpose(x_nchw, (0, 2, 3, 1)).astype(in_dtype)
    xp = jnp.pad(x, ((0, 0), (1, hq * s - H - 1), (1, wq * s - W - 1), (0, 0)))
    xr = xp.reshape(N, hq, s, wq, s, Cin)
    xr = jnp.transpose(xr, (0, 2, 1, 4, 3, 5)).reshape(N, hr, wc, Cin)

    # ---- fold eval-mode BN into weights / shifts ----------------------------
    g1, be1, m1, v1 = bn1
    inv1 = g1 / jnp.sqrt(v1 + _EPS)
    g2, be2, m2, v2 = bn2
    inv2 = g2 / jnp.sqrt(v2 + _EPS)
    wdw = (jnp.transpose(w_dw.reshape(Cin, 9), (1, 0)) * inv1[None, :]).astype(dw_dtype)
    b1 = (be1 - m1 * inv1).reshape(1, Cin).astype(dw_dtype)
    wpw = (jnp.transpose(w_pw.reshape(Cout, Cin), (1, 0)) * inv2[None, :]).astype(mxu_dtype)
    b2 = (be2 - m2 * inv2).reshape(1, Cout).astype(jnp.float32)

    kernel = _make_kernel(stride=s, hq=hq, wq=wq, tile_ho=tile_ho,
                          wo_pad=wo_pad, cin=Cin, cout=Cout)

    flops = 2 * N * Ho * wo_pad * Cin * Cout + 2 * 9 * N * Ho * wo_pad * Cin
    bytes_accessed = (xr.size * xr.dtype.itemsize
                      + wdw.size * wdw.dtype.itemsize + b1.size * b1.dtype.itemsize
                      + wpw.size * wpw.dtype.itemsize + b2.size * b2.dtype.itemsize
                      + N * Ho * wo_pad * Cout * out_item)

    out = pl.pallas_call(
        kernel,
        out_shape=jax.ShapeDtypeStruct((N, Ho, wo_pad, Cout), out_dtype),
        grid=(N, T),
        in_specs=[
            pl.BlockSpec((None, hr, wc, Cin), lambda n, t: (n, 0, 0, 0)),
            pl.BlockSpec((9, Cin), lambda n, t: (0, 0)),
            pl.BlockSpec((1, Cin), lambda n, t: (0, 0)),
            pl.BlockSpec((Cin, Cout), lambda n, t: (0, 0)),
            pl.BlockSpec((1, Cout), lambda n, t: (0, 0)),
        ],
        out_specs=pl.BlockSpec((None, tile_ho, wo_pad, Cout),
                               lambda n, t: (n, t, 0, 0)),
        compiler_params=pltpu.CompilerParams(
            dimension_semantics=("parallel", "parallel"),
            vmem_limit_bytes=int(vmem_cap * 0.75)),
        cost_estimate=pl.CostEstimate(flops=flops, transcendentals=0,
                                      bytes_accessed=bytes_accessed),
    )(xr, wdw, b1, wpw, b2)

    out = out[:, :, :Wo, :]                 # drop padded columns (fuses with transpose)
    return jnp.transpose(out, (0, 3, 1, 2)).astype(x_nchw.dtype)


def _reference(x_nchw, w_dw, w_pw, bn1, bn2, *, stride):
    """Pure-JAX reference (lax convs), eval-mode BN, for correctness check."""
    Cin = x_nchw.shape[1]
    dn = lax.conv_dimension_numbers(x_nchw.shape, w_dw.shape, ("NCHW", "OIHW", "NCHW"))
    y = lax.conv_general_dilated(x_nchw, w_dw, (stride, stride), ((1, 1), (1, 1)),
                                 dimension_numbers=dn, feature_group_count=Cin)
    g1, b1, m1, v1 = bn1
    y = (y - m1[None, :, None, None]) / jnp.sqrt(v1[None, :, None, None] + _EPS)
    y = y * g1[None, :, None, None] + b1[None, :, None, None]
    y = jnp.maximum(y, 0.0)
    dn2 = lax.conv_dimension_numbers(y.shape, w_pw.shape, ("NCHW", "OIHW", "NCHW"))
    z = lax.conv_general_dilated(y, w_pw, (1, 1), ((0, 0), (0, 0)), dimension_numbers=dn2)
    g2, b2, m2, v2 = bn2
    z = (z - m2[None, :, None, None]) / jnp.sqrt(v2[None, :, None, None] + _EPS)
    z = z * g2[None, :, None, None] + b2[None, :, None, None]
    return jnp.maximum(z, 0.0)


if __name__ == "__main__":
    N, Cin, Cout, H, W = 2, 16, 32, 16, 16

    key = jax.random.PRNGKey(0)
    ks = jax.random.split(key, 9)
    x = jax.random.normal(ks[0], (N, Cin, H, W), dtype=jnp.float32)
    w_dw = jax.random.normal(ks[1], (Cin, 1, 3, 3), dtype=jnp.float32) * 0.2
    w_pw = jax.random.normal(ks[2], (Cout, Cin, 1, 1), dtype=jnp.float32) * 0.2
    bn1 = (1.0 + 0.1 * jax.random.normal(ks[3], (Cin,), dtype=jnp.float32),     # gamma
           0.1 * jax.random.normal(ks[4], (Cin,), dtype=jnp.float32),           # beta
           0.1 * jax.random.normal(ks[5], (Cin,), dtype=jnp.float32),           # running_mean
           jnp.abs(jax.random.normal(ks[6], (Cin,), dtype=jnp.float32)) + 0.5)  # running_var
    bn2 = (1.0 + 0.1 * jax.random.normal(ks[7], (Cout,), dtype=jnp.float32),
           0.1 * jax.random.normal(ks[8], (Cout,), dtype=jnp.float32),
           jnp.zeros((Cout,), jnp.float32),
           jnp.ones((Cout,), jnp.float32))

    # Tolerance reflects bf16 input tiles, bf16 depthwise accumulation
    # (v6e/v7x) and bf16 MXU operands with f32 accumulation.
    for stride in (2, 1):
        out = jax.block_until_ready(
            depthwise_separable_conv(x, w_dw, w_pw, bn1, bn2, stride=stride))
        ref = jax.block_until_ready(_reference(x, w_dw, w_pw, bn1, bn2, stride=stride))
        Ho = (H - 1) // stride + 1
        assert out.shape == ref.shape == (N, Cout, Ho, Ho), (stride, out.shape)
        max_err = float(jnp.max(jnp.abs(out - ref)))
        assert jnp.allclose(out, ref, atol=1e-1, rtol=1e-1), (stride, max_err)

    print("KERNEL_OK")
</pallas_src>

<mosaic_0001>
module attributes {stable_mosaic.version = 11 : i64} {
  func.func @kernel(%arg0: i32, %arg1: i32, %arg2: memref<1x18x18x16xbf16, #tpu.memory_space<vmem>>, %arg3: memref<9x16xbf16, #tpu.memory_space<vmem>>, %arg4: memref<1x16xbf16, #tpu.memory_space<vmem>>, %arg5: memref<16x32xbf16, #tpu.memory_space<vmem>>, %arg6: memref<1x32xf32, #tpu.memory_space<vmem>>, %arg7: memref<1x8x8x32xf32, #tpu.memory_space<vmem>>) attributes {dimension_semantics = [#tpu.dimension_semantics<parallel>, #tpu.dimension_semantics<parallel>], iteration_bounds = array<i64: 2, 1>, scalar_prefetch = 0 : i64, scratch_operands = 0 : i64, tpu.core_type = #tpu.core_type<tc>, window_params = [{transform_indices = @transform_0, window_bounds = array<i64: 1, 18, 18, 16>}, {pipeline_mode = #tpu.pipeline_mode<synchronous>, transform_indices = @transform_1, window_bounds = array<i64: 9, 16>}, {pipeline_mode = #tpu.pipeline_mode<synchronous>, transform_indices = @transform_2, window_bounds = array<i64: 1, 16>}, {pipeline_mode = #tpu.pipeline_mode<synchronous>, transform_indices = @transform_3, window_bounds = array<i64: 16, 32>}, {pipeline_mode = #tpu.pipeline_mode<synchronous>, transform_indices = @transform_4, window_bounds = array<i64: 1, 32>}, {transform_indices = @transform_5, window_bounds = array<i64: 1, 8, 8, 32>}]} {
    %c8_i32 = arith.constant 8 : i32
    %0 = arith.muli %arg1, %c8_i32 : i32
    %c0_i32 = arith.constant 0 : i32
    %1 = arith.addi %c0_i32, %0 : i32
    %c0 = arith.constant 0 : index
    %2 = arith.index_cast %1 : i32 to index
    %c0_0 = arith.constant 0 : index
    %c0_1 = arith.constant 0 : index
    %3 = vector.load %arg2[%c0, %2, %c0_0, %c0_1] : memref<1x18x18x16xbf16, #tpu.memory_space<vmem>>, vector<1x8x8x16xbf16>
    %4 = vector.shape_cast %3 : vector<1x8x8x16xbf16> to vector<8x8x16xbf16>
    %c0_2 = arith.constant 0 : index
    %c0_3 = arith.constant 0 : index
    %5 = vector.load %arg3[%c0_2, %c0_3] : memref<9x16xbf16, #tpu.memory_space<vmem>>, vector<1x16xbf16>
    %6 = vector.shape_cast %5 : vector<1x16xbf16> to vector<1x1x16xbf16>
    %7 = vector.broadcast %6 : vector<1x1x16xbf16> to vector<8x8x16xbf16>
    %8 = arith.mulf %4, %7 : vector<8x8x16xbf16>
    %c0_i32_4 = arith.constant 0 : i32
    %9 = arith.addi %c0_i32_4, %0 : i32
    %c0_5 = arith.constant 0 : index
    %10 = arith.index_cast %9 : i32 to index
    %c9 = arith.constant 9 : index
    %c0_6 = arith.constant 0 : index
    %11 = vector.load %arg2[%c0_5, %10, %c9, %c0_6] : memref<1x18x18x16xbf16, #tpu.memory_space<vmem>>, vector<1x8x8x16xbf16>
    %12 = vector.shape_cast %11 : vector<1x8x8x16xbf16> to vector<8x8x16xbf16>
    %c1 = arith.constant 1 : index
    %c0_7 = arith.constant 0 : index
    %13 = vector.load %arg3[%c1, %c0_7] : memref<9x16xbf16, #tpu.memory_space<vmem>>, vector<1x16xbf16>
    %14 = vector.shape_cast %13 : vector<1x16xbf16> to vector<1x1x16xbf16>
    %15 = vector.broadcast %14 : vector<1x1x16xbf16> to vector<8x8x16xbf16>
    %16 = arith.mulf %12, %15 : vector<8x8x16xbf16>
    %17 = arith.addf %8, %16 : vector<8x8x16xbf16>
    %c0_i32_8 = arith.constant 0 : i32
    %18 = arith.addi %c0_i32_8, %0 : i32
    %c0_9 = arith.constant 0 : index
    %19 = arith.index_cast %18 : i32 to index
    %c1_10 = arith.constant 1 : index
    %c0_11 = arith.constant 0 : index
    %20 = vector.load %arg2[%c0_9, %19, %c1_10, %c0_11] : memref<1x18x18x16xbf16, #tpu.memory_space<vmem>>, vector<1x8x8x16xbf16>
    %21 = vector.shape_cast %20 : vector<1x8x8x16xbf16> to vector<8x8x16xbf16>
    %c2 = arith.constant 2 : index
    %c0_12 = arith.constant 0 : index
    %22 = vector.load %arg3[%c2, %c0_12] : memref<9x16xbf16, #tpu.memory_space<vmem>>, vector<1x16xbf16>
    %23 = vector.shape_cast %22 : vector<1x16xbf16> to vector<1x1x16xbf16>
    %24 = vector.broadcast %23 : vector<1x1x16xbf16> to vector<8x8x16xbf16>
    %25 = arith.mulf %21, %24 : vector<8x8x16xbf16>
    %26 = arith.addf %17, %25 : vector<8x8x16xbf16>
    %c9_i32 = arith.constant 9 : i32
    %27 = arith.addi %c9_i32, %0 : i32
    %c0_13 = arith.constant 0 : index
    %28 = arith.index_cast %27 : i32 to index
    %c0_14 = arith.constant 0 : index
    %c0_15 = arith.constant 0 : index
    %29 = vector.load %arg2[%c0_13, %28, %c0_14, %c0_15] : memref<1x18x18x16xbf16, #tpu.memory_space<vmem>>, vector<1x8x8x16xbf16>
    %30 = vector.shape_cast %29 : vector<1x8x8x16xbf16> to vector<8x8x16xbf16>
    %c3 = arith.constant 3 : index
    %c0_16 = arith.constant 0 : index
    %31 = vector.load %arg3[%c3, %c0_16] : memref<9x16xbf16, #tpu.memory_space<vmem>>, vector<1x16xbf16>
    %32 = vector.shape_cast %31 : vector<1x16xbf16> to vector<1x1x16xbf16>
    %33 = vector.broadcast %32 : vector<1x1x16xbf16> to vector<8x8x16xbf16>
    %34 = arith.mulf %30, %33 : vector<8x8x16xbf16>
    %35 = arith.addf %26, %34 : vector<8x8x16xbf16>
    %c9_i32_17 = arith.constant 9 : i32
    %36 = arith.addi %c9_i32_17, %0 : i32
    %c0_18 = arith.constant 0 : index
    %37 = arith.index_cast %36 : i32 to index
    %c9_19 = arith.constant 9 : index
    %c0_20 = arith.constant 0 : index
    %38 = vector.load %arg2[%c0_18, %37, %c9_19, %c0_20] : memref<1x18x18x16xbf16, #tpu.memory_space<vmem>>, vector<1x8x8x16xbf16>
    %39 = vector.shape_cast %38 : vector<1x8x8x16xbf16> to vector<8x8x16xbf16>
    %c4 = arith.constant 4 : index
    %c0_21 = arith.constant 0 : index
    %40 = vector.load %arg3[%c4, %c0_21] : memref<9x16xbf16, #tpu.memory_space<vmem>>, vector<1x16xbf16>
    %41 = vector.shape_cast %40 : vector<1x16xbf16> to vector<1x1x16xbf16>
    %42 = vector.broadcast %41 : vector<1x1x16xbf16> to vector<8x8x16xbf16>
    %43 = arith.mulf %39, %42 : vector<8x8x16xbf16>
    %44 = arith.addf %35, %43 : vector<8x8x16xbf16>
    %c9_i32_22 = arith.constant 9 : i32
    %45 = arith.addi %c9_i32_22, %0 : i32
    %c0_23 = arith.constant 0 : index
    %46 = arith.index_cast %45 : i32 to index
    %c1_24 = arith.constant 1 : index
    %c0_25 = arith.constant 0 : index
    %47 = vector.load %arg2[%c0_23, %46, %c1_24, %c0_25] : memref<1x18x18x16xbf16, #tpu.memory_space<vmem>>, vector<1x8x8x16xbf16>
    %48 = vector.shape_cast %47 : vector<1x8x8x16xbf16> to vector<8x8x16xbf16>
    %c5 = arith.constant 5 : index
    %c0_26 = arith.constant 0 : index
    %49 = vector.load %arg3[%c5, %c0_26] : memref<9x16xbf16, #tpu.memory_space<vmem>>, vector<1x16xbf16>
    %50 = vector.shape_cast %49 : vector<1x16xbf16> to vector<1x1x16xbf16>
    %51 = vector.broadcast %50 : vector<1x1x16xbf16> to vector<8x8x16xbf16>
    %52 = arith.mulf %48, %51 : vector<8x8x16xbf16>
    %53 = arith.addf %44, %52 : vector<8x8x16xbf16>
    %c1_i32 = arith.constant 1 : i32
    %54 = arith.addi %c1_i32, %0 : i32
    %c0_27 = arith.constant 0 : index
    %55 = arith.index_cast %54 : i32 to index
    %c0_28 = arith.constant 0 : index
    %c0_29 = arith.constant 0 : index
    %56 = vector.load %arg2[%c0_27, %55, %c0_28, %c0_29] : memref<1x18x18x16xbf16, #tpu.memory_space<vmem>>, vector<1x8x8x16xbf16>
    %57 = vector.shape_cast %56 : vector<1x8x8x16xbf16> to vector<8x8x16xbf16>
    %c6 = arith.constant 6 : index
    %c0_30 = arith.constant 0 : index
    %58 = vector.load %arg3[%c6, %c0_30] : memref<9x16xbf16, #tpu.memory_space<vmem>>, vector<1x16xbf16>
    %59 = vector.shape_cast %58 : vector<1x16xbf16> to vector<1x1x16xbf16>
    %60 = vector.broadcast %59 : vector<1x1x16xbf16> to vector<8x8x16xbf16>
    %61 = arith.mulf %57, %60 : vector<8x8x16xbf16>
    %62 = arith.addf %53, %61 : vector<8x8x16xbf16>
    %c1_i32_31 = arith.constant 1 : i32
    %63 = arith.addi %c1_i32_31, %0 : i32
    %c0_32 = arith.constant 0 : index
    %64 = arith.index_cast %63 : i32 to index
    %c9_33 = arith.constant 9 : index
    %c0_34 = arith.constant 0 : index
    %65 = vector.load %arg2[%c0_32, %64, %c9_33, %c0_34] : memref<1x18x18x16xbf16, #tpu.memory_space<vmem>>, vector<1x8x8x16xbf16>
    %66 = vector.shape_cast %65 : vector<1x8x8x16xbf16> to vector<8x8x16xbf16>
    %c7 = arith.constant 7 : index
    %c0_35 = arith.constant 0 : index
    %67 = vector.load %arg3[%c7, %c0_35] : memref<9x16xbf16, #tpu.memory_space<vmem>>, vector<1x16xbf16>
    %68 = vector.shape_cast %67 : vector<1x16xbf16> to vector<1x1x16xbf16>
    %69 = vector.broadcast %68 : vector<1x1x16xbf16> to vector<8x8x16xbf16>
    %70 = arith.mulf %66, %69 : vector<8x8x16xbf16>
    %71 = arith.addf %62, %70 : vector<8x8x16xbf16>
    %c1_i32_36 = arith.constant 1 : i32
    %72 = arith.addi %c1_i32_36, %0 : i32
    %c0_37 = arith.constant 0 : index
    %73 = arith.index_cast %72 : i32 to index
    %c1_38 = arith.constant 1 : index
    %c0_39 = arith.constant 0 : index
    %74 = vector.load %arg2[%c0_37, %73, %c1_38, %c0_39] : memref<1x18x18x16xbf16, #tpu.memory_space<vmem>>, vector<1x8x8x16xbf16>
    %75 = vector.shape_cast %74 : vector<1x8x8x16xbf16> to vector<8x8x16xbf16>
    %c8 = arith.constant 8 : index
    %c0_40 = arith.constant 0 : index
    %76 = vector.load %arg3[%c8, %c0_40] : memref<9x16xbf16, #tpu.memory_space<vmem>>, vector<1x16xbf16>
    %77 = vector.shape_cast %76 : vector<1x16xbf16> to vector<1x1x16xbf16>
    %78 = vector.broadcast %77 : vector<1x1x16xbf16> to vector<8x8x16xbf16>
    %79 = arith.mulf %75, %78 : vector<8x8x16xbf16>
    %80 = arith.addf %71, %79 : vector<8x8x16xbf16>
    %c0_41 = arith.constant 0 : index
    %c0_42 = arith.constant 0 : index
    %81 = vector.load %arg4[%c0_41, %c0_42] : memref<1x16xbf16, #tpu.memory_space<vmem>>, vector<1x16xbf16>
    %82 = vector.shape_cast %81 : vector<1x16xbf16> to vector<1x1x16xbf16>
    %83 = vector.broadcast %82 : vector<1x1x16xbf16> to vector<8x8x16xbf16>
    %84 = arith.addf %80, %83 : vector<8x8x16xbf16>
    %cst = arith.constant 0.000000e+00 : bf16
    %85 = vector.broadcast %cst : bf16 to vector<8x8x16xbf16>
    %86 = arith.maximumf %84, %85 : vector<8x8x16xbf16>
    %87 = vector.shape_cast %86 : vector<8x8x16xbf16> to vector<64x16xbf16>
    %c0_43 = arith.constant 0 : index
    %c0_44 = arith.constant 0 : index
    %88 = vector.load %arg5[%c0_43, %c0_44] : memref<16x32xbf16, #tpu.memory_space<vmem>>, vector<16x32xbf16>
    %cst_45 = arith.constant dense<0.000000e+00> : vector<64x32xf32>
    %89 = tpu.matmul %87, %88, %cst_45 {dimension_numbers = #tpu.dot_dimension_numbers<[1], [0], [0], [1], [0, 0, 1, 1], [], []>} : vector<64x16xbf16>, vector<16x32xbf16>, vector<64x32xf32> -> vector<64x32xf32>
    %c0_46 = arith.constant 0 : index
    %c0_47 = arith.constant 0 : index
    %90 = vector.load %arg6[%c0_46, %c0_47] : memref<1x32xf32, #tpu.memory_space<vmem>>, vector<1x32xf32>
    %91 = vector.broadcast %90 : vector<1x32xf32> to vector<64x32xf32>
    %92 = arith.addf %89, %91 : vector<64x32xf32>
    %cst_48 = arith.constant 0.000000e+00 : f32
    %93 = vector.broadcast %cst_48 : f32 to vector<64x32xf32>
    %94 = arith.maximumf %92, %93 : vector<64x32xf32>
    %95 = vector.shape_cast %94 : vector<64x32xf32> to vector<8x8x32xf32>
    %c0_49 = arith.constant 0 : index
    %c0_50 = arith.constant 0 : index
    %c0_51 = arith.constant 0 : index
    %c0_52 = arith.constant 0 : index
    %96 = vector.load %arg7[%c0_49, %c0_50, %c0_51, %c0_52] : memref<1x8x8x32xf32, #tpu.memory_space<vmem>>, vector<1x8x8x32xf32>
    %97 = vector.shape_cast %96 : vector<1x8x8x32xf32> to vector<8x8x32xf32>
    %98 = vector.shape_cast %95 : vector<8x8x32xf32> to vector<1x8x8x32xf32>
    tpu.vector_store %arg7[%c0_49, %c0_50, %c0_51, %c0_52], %98 {strides = array<i32>} : memref<1x8x8x32xf32, #tpu.memory_space<vmem>>, vector<1x8x8x32xf32>,
    return
  }
  func.func @transform_0(%arg0: i32, %arg1: i32) -> (i32, i32, i32, i32) {
    %c0_i32 = arith.constant 0 : i32
    %c0_i32_0 = arith.constant 0 : i32
    %c0_i32_1 = arith.constant 0 : i32
    %c0_i32_2 = arith.constant 0 : i32
    return %arg0, %c0_i32, %c0_i32_0, %c0_i32_1 : i32, i32, i32, i32
  }
  func.func @transform_1(%arg0: i32, %arg1: i32) -> (i32, i32) {
    %c0_i32 = arith.constant 0 : i32
    %c0_i32_0 = arith.constant 0 : i32
    %c0_i32_1 = arith.constant 0 : i32
    return %c0_i32, %c0_i32_0 : i32, i32
  }
  func.func @transform_2(%arg0: i32, %arg1: i32) -> (i32, i32) {
    %c0_i32 = arith.constant 0 : i32
    %c0_i32_0 = arith.constant 0 : i32
    %c0_i32_1 = arith.constant 0 : i32
    return %c0_i32, %c0_i32_0 : i32, i32
  }
  func.func @transform_3(%arg0: i32, %arg1: i32) -> (i32, i32) {
    %c0_i32 = arith.constant 0 : i32
    %c0_i32_0 = arith.constant 0 : i32
    %c0_i32_1 = arith.constant 0 : i32
    return %c0_i32, %c0_i32_0 : i32, i32
  }
  func.func @transform_4(%arg0: i32, %arg1: i32) -> (i32, i32) {
    %c0_i32 = arith.constant 0 : i32
    %c0_i32_0 = arith.constant 0 : i32
    %c0_i32_1 = arith.constant 0 : i32
    return %c0_i32, %c0_i32_0 : i32, i32
  }
  func.func @transform_5(%arg0: i32, %arg1: i32) -> (i32, i32, i32, i32) {
    %c0_i32 = arith.constant 0 : i32
    %c0_i32_0 = arith.constant 0 : i32
    %c0_i32_1 = arith.constant 0 : i32
    return %arg0, %arg1, %c0_i32, %c0_i32_0 : i32, i32, i32, i32
  }
}

</mosaic_0001>

<bundles_post_ra>
// kernel: tpu_custom_call.1
= control target key start
LH: loop header
LB: loop body
LE: loop exit
PB: predicated region body
PF: predicated region fallthrough
CT: control target
= control target key end

     0   :  { %10 = vsyncpa [#allocation3], 0  ;;  %s2469_s0 = inlined_call_operand.vmem [shape: bf16[2,18,18,16], index: 0, kind: input, shape index: {}]   ;;  %s2470_s1 = inlined_call_operand.vmem [shape: bf16[9,16], index: 1, kind: input, shape index: {}]   ;;  %s2471_s2 = inlined_call_operand.vmem [shape: bf16[1,16], index: 2, kind: input, shape index: {}]   ;;  %s2472_s3 = inlined_call_operand.vmem [shape: bf16[16,32], index: 3, kind: input, shape index: {}]   ;;  %s2473_s4 = inlined_call_operand.vmem [shape: f32[1,32], index: 4, kind: input, shape index: {}]   ;;  %s2474_s5 = inlined_call_operand.hbm [shape: f32[2,8,8,32], index: 5, kind: output, shape index: {}]  }
   0x1   :  { %12 = vsyncpa [#allocation3 + $0x1], 0  ;;  %s1883_s18 = smov 0   ;;  %s1885_s19 = smov 0  }
   0x2   :  { %s1887_s20 = smov 0   ;;  %s1889_s21 = smov 0  }
   0x3   :  { %s1891_s22 = smov 0   ;;  %s1893_s23 = smov 0  }
   0x4 LB: > { %s1599_s24 = sadd.s32 4294967295, %s1847_s23   ;;  %s1600_s25 = sadd.s32 4294967294, %s1847_s23   ;;  %s1847_s23 = sphi %s1893_s23, %s18_s23   ;;  %s1843_s22 = sphi %s1891_s22, %s2483_s22   ;;  %s1839_s21 = sphi %s1889_s21, %s2482_s21   ;;  %s1835_s20 = sphi %s1887_s20, %s2481_s20   ;;  %s1831_s19 = sphi %s1885_s19, %s2480_s19   ;;  %s1827_s18 = sphi %s1883_s18, %s2479_s18  }
   0x5   : > { %s30_s26 = sadd.s32 1, %s1843_s22  ;;  %s149_s27 = sadd.s32 1, %s1835_s20 }
   0x6   : > { %p32_p0 = scmp.ge.s32.totalorder %s30_s26, 2  ;;  %p159_p1 = scmp.ne.s32.totalorder %s1835_s20, %s1831_s19 }
   0x7   : > { %p160_p2 = scmp.eq.s32.totalorder %s1599_s24, 1  ;;  %p165_p3 = scmp.ne.s32.totalorder %s1831_s19, %s1827_s18 }
   0x8   : > { %s2485_s26 = smov (%p32_p0, %s30_s26), 0  ;;  %p166_p5 = scmp.eq.s32.totalorder %s1600_s25, 1 }
   0x9   : > { %p1923_p4 = por %p160_p2, %p159_p1  ;;  %s144_s29 = ssub.s32 %s1843_s22, %s2485_s26 }
   0xa   : > { %p1603_p6 = scmp.ge.s32.totalorder %s1847_s23, 1  ;;  %p147_p7 = scmp.eq.s32.totalorder %s144_s29, 0 }
   0xb   : > { %p1930_p8 = por %p166_p5, %p165_p3  ;;  %p204_p9 = scmp.lt.s32.totalorder %s1847_s23, 3 }
   0xc   : > { %s1936_s6 = scalar_select %p147_p7, %s1835_s20, %s149_s27  }
   0xd   : > { %p205_p10 = pnand %p1603_p6, %p204_p9 }
   0xe   : > { %v1768_v0 = vld [vmem:[%s2472_s3] sm:$0xff] (!%p205_p10)   ;;  %p232_p11 = scmp.lt.s32.totalorder (!%p205_p10), %s1839_s21, 1  ;;  %v255_v1 = vlaneseq (!%p205_p10)  ;;  %vm310_vm0 = vsmask.f32 (!%p205_p10), 3328  ;;  %vm311_vm1 = vsmask.f32 (!%p205_p10), 7440 }
   0xf   : > { %208 = sbr.rel (%p205_p10) target bundleno = 433 (0x1b1), region = 40  ;;  %v251_v2 = vld [vmem:[%s2470_s1] sm:$0x1] (!%p205_p10)  ;;  %1697 = vmatprep.subr.bf16.mxu0 (!%p205_p10), %v1768_v0  ;;  %1707 = vmatprep.subr.bf16.mxu1 (!%p205_p10), %v1768_v0  ;;  %v449_v6 = vld [vmem:[%s2470_s1] sm:$0x2] (!%p205_p10)  ;;  %vm2026_vm2 = vmor (!%p205_p10), %vm310_vm0, %vm311_vm1  ;;  %vm1405_vm3 = vcmask (!%p205_p10), 130048  }
  0x10   : > { %v253_v3 = vpack.i.b16 (!%p205_p10), %v251_v2, %v251_v2  ;;  %v1946_v4 = vshrl.u32 (!%p205_p10), %v255_v1, 7  ;;  %v283_v5 = vshrl.u32 (!%p205_p10), %v251_v2, 16  ;;  %1698 = vmatpush3.bf16.msra.mxu0 (!%p205_p10), %v1768_v0  ;;  %1708 = vmatpush3.bf16.msra.mxu1 (!%p205_p10), %v1768_v0  ;;  %v451_v7 = vpack.i.b16 (!%p205_p10), %v449_v6, %v449_v6  ;;  %v656_v9 = vld [vmem:[%s2470_s1] sm:$0x4] (!%p205_p10)  ;;  %v1957_v10 = vld [vmem:[%s2470_s1] sm:$0x8] (!%p205_p10) }
  0x11   : > { %v617_v8 = vshrl.u32 (!%p205_p10), %v449_v6, 16  ;;  %v658_v14 = vpack.i.b16 (!%p205_p10), %v656_v9, %v656_v9  ;;  %v1190_v15 = vld [vmem:[%s2470_s1 + $0x4] sm:$0x1] (!%p205_p10)  ;;  %v820_v18 = vshrl.u32 (!%p205_p10), %v656_v9, 16  ;;  %v989_v19 = vpack.i.b16 (!%p205_p10), %v1957_v10, %v1957_v10  ;;  %s1691_s16 = sshll.u32 (!%p205_p10), %s1839_s21, 10  ;;  %s1850_s7 = smov (!%p205_p10), [#allocation2]  }
  0x12   : > { %v1960_v11 = vsub.s32 (!%p205_p10), 0, %v1946_v4  ;;  %v284_v12 = vpack.i.b16 (!%p205_p10), %v283_v5, %v283_v5  ;;  %v455_v13 = vsub.s32 (!%p205_p10), 1, %v1946_v4  ;;  %v662_v17 = vsub.s32 (!%p205_p10), 2, %v1946_v4  ;;  %s2414_s27 = scalar_lea.hbm (!%p205_p10), %s2474_s5, %s1691_s16 }
  0x13   : > { %v618_v16 = vpack.i.b16 (!%p205_p10), %v617_v8, %v617_v8  ;;  %v993_v23 = vsub.s32 (!%p205_p10), 3, %v1946_v4  ;;  %v821_v29 = vpack.i.b16 (!%p205_p10), %v820_v18, %v820_v18  ;;  %v1192_v30 = vpack.i.b16 (!%p205_p10), %v1190_v15, %v1190_v15 }
  0x14   : > { %v1975_v20 = vrot.slane (!%p205_p10), %v253_v3, %v1960_v11  ;;  %v289_v21 = vrot.slane (!%p205_p10), %v284_v12, %v1960_v11  ;;  %v456_v22 = vrot.slane (!%p205_p10), %v451_v7, %v455_v13  ;;  %v663_v28 = vrot.slane (!%p205_p10), %v658_v14, %v662_v17 }
  0x15   : > { %v1986_v27 = vrot.slane (!%p205_p10), %v618_v16, %v455_v13  ;;  %v2003_v41 = vrot.slane (!%p205_p10), %v821_v29, %v662_v17  ;;  %v2007_v42 = vrot.slane (!%p205_p10), %v989_v19, %v993_v23  ;;  %v2010_v43 = vrot.slane (!%p205_p10), %v1192_v30, %v1960_v11 }
  0x16   : > { %s233_s11 = scalar_select %p232_p11, %s1839_s21, 1  ;;  %v1995_v36 = vcombine.low %v289_v21, %v289_v21  ;;  %v1997_v37 = vcombine.low %v456_v22, %v456_v22  ;;  %v2001_v40 = vcombine.low %v663_v28, %v663_v28  ;;  %vm1491_vm4 = vcmask 261120  }
  0x18   : > { %s1709_s24 = smul.u32 216, %s233_s11  ;;  %s229_s11 = sand.u32 1, %s1831_s19  }
  0x19   : > { %s1604_s14 = sshll.u32 %s229_s11, 6  ;;  %s2423_s21 = scalar_lea.sflag [#allocation3], %s229_s11 }
  0x1a   : > { %s1972_s8 = scalar_lea.vmem %s2469_s0, %s1709_s24  ;;  %s231_s15 = scalar_lea.vmem [#allocation2], %s1604_s14 }
  0x1b   : > { %v1980_v24 = vld [vmem:[%s1972_s8] sm:$0xf]  ;;  %v1983_v25 = vld [vmem:[%s1972_s8 + $0xc] sm:$0xf]  ;;  %v267_v26 = vld [vmem:[%s1972_s8 + $0x4] sm:$0xf] }
  0x1c   : > { %v259_v31 = vmul.bf16 %v1975_v20, %v1980_v24  ;;  %v260_v32 = vmul.bf16 %v1975_v20, %v1983_v25  ;;  %v268_v33 = vld [vmem:[%s1972_s8 + $0x8] sm:$0x1]  ;;  %v269_v34 = vld [vmem:[%s1972_s8 + $0x10] sm:$0xf]  ;;  %v270_v35 = vld [vmem:[%s1972_s8 + $0x14] sm:$0x1]  ;;  %v294_v44 = vmul.bf16 %v1995_v36, %v267_v26  ;;  %v461_v48 = vmul.bf16 %v1997_v37, %v1980_v24 }
  0x1d   : > { %v441_v38 = vld [vmem:[%s1972_s8 + $0x4] sm:$0x1]  ;;  %v442_v39 = vld [vmem:[%s1972_s8 + $0x10] sm:$0x1]  ;;  %v295_v45 = vmul.bf16 %v1995_v36, %v268_v33  ;;  %v296_v46 = vmul.bf16 %v1995_v36, %v269_v34  ;;  %v297_v47 = vmul.bf16 %v1995_v36, %v270_v35  ;;  %v463_v50 = vmul.bf16 %v1997_v37, %v1983_v25  ;;  %v1608_v5 = vld [vmem:[%s1972_s8 + $0x6c] sm:$0xf] }
  0x1e   : > { %v462_v49 = vmul.bf16 %v1997_v37, %v441_v38  ;;  %v464_v51 = vmul.bf16 %v1997_v37, %v442_v39  ;;  %v314_v52 = vshrl.u32 %v294_v44, 16  ;;  %v317_v53 = vshll.u32 %v294_v44, 16  ;;  %v1609_v12 = vld [vmem:[%s1972_s8 + $0x78] sm:$0xf]  ;;  %v1616_v18 = vld [vmem:[%s1972_s8 + $0x70] sm:$0xf] }
  0x1f   : > { %v323_v54 = vshll.u32 %v295_v45, 16  ;;  %v328_v55 = vshrl.u32 %v296_v46, 16  ;;  %v331_v56 = vshll.u32 %v296_v46, 16  ;;  %v337_v57 = vshll.u32 %v297_v47, 16  ;;  %v1617_v19 = vld [vmem:[%s1972_s8 + $0x74] sm:$0x1] }
  0x20   : > { %v478_v58 = vshrl.u32 %v461_v48, 16  ;;  %v481_v59 = vshll.u32 %v461_v48, 16  ;;  %v316_v60 = vrot.slane %v314_v52, 4  ;;  %v319_v61 = vrot.slane %v317_v53, 5  ;;  %v1618_v29 = vld [vmem:[%s1972_s8 + $0x7c] sm:$0xf] }
  0x21   : > { %v325_v62 = vrot.slane %v323_v54, 5  ;;  %v330_v63 = vrot.slane %v328_v55, 4  ;;  %v333_v0 = vrot.slane %v331_v56, 5  ;;  %v339_v1 = vrot.slane %v337_v57, 5  ;;  %v1619_v38 = vld [vmem:[%s1972_s8 + $0x80] sm:$0x1] }
  0x22   : > { %v480_v2 = vrot.slane %v478_v58, 4  ;;  %v483_v3 = vrot.slane %v481_v59, 5  ;;  %v320_v6 = vor.u32 %v319_v61, %v316_v60  ;;  %v487_v7 = vshll.u32 %v462_v49, 16  ;;  %v1633_v61 = vld [vmem:[%s1972_s8 + $0x70] sm:$0x1]  ;;  %s1516_s17 = sshll.u32 %s231_s15, 4  ;;  %s2416_s17 = int_to_ptr.vmem [resolvable:$true] %s1516_s17 }
  0x23   : > { %v492_v8 = vshrl.u32 %v463_v50, 16  ;;  %v495_v9 = vshll.u32 %v463_v50, 16  ;;  %v334_v14 = vor.u32 %v333_v0, %v330_v63  ;;  %v501_v16 = vshll.u32 %v464_v51, 16  ;;  %v1634_v0 = vld [vmem:[%s1972_s8 + $0x7c] sm:$0x1]  ;;  %s1769_s29 = scalar_lea.vmem %s2416_s17, 1024 }
  0x24   : > { %v484_v15 = vor.u32 %v483_v3, %v480_v2  ;;  %v624_v17 = vmul.bf16 %v1608_v5, %v1986_v27  ;;  %v321_v21 = vrot.slane %v320_v6, 4  ;;  %v489_v22 = vrot.slane %v487_v7, 5  ;;  %p1770_p12 = scmp.ne.s32.totalorder %s2416_s17, %s1769_s29 }
  0x25   : > { %v494_v26 = vrot.slane %v492_v8, 4  ;;  %v497_v28 = vrot.slane %v495_v9, 5  ;;  %v335_v30 = vrot.slane %v334_v14, 4  ;;  %v503_v34 = vrot.slane %v501_v16, 5  ;;  %v2066_v8 = vld [vmem:[%s1972_s8 + $0x18] sm:$0xf] }
  0x26   : > { %v485_v33 = vrot.slane %v484_v15, 4  ;;  %v625_v35 = vmul.bf16 %v1609_v12, %v1986_v27  ;;  %v326_v39 = vsel %vm2026_vm2, %v321_v21, %v325_v62  ;;  %v668_v45 = vmul.bf16 %v2001_v40, %v1616_v18  ;;  %p1771_p13 = pnand %p1770_p12, %p1923_p4 }
  0x27   : > { %v498_v44 = vor.u32 %v497_v28, %v494_v26  ;;  %v669_v46 = vmul.bf16 %v2001_v40, %v1617_v19  ;;  %v340_v47 = vsel %vm2026_vm2, %v335_v30, %v339_v1  ;;  %v433_v48 = vadd.bf16 %v326_v39, %v259_v31  ;;  %v2059_v1 = vld [vmem:[%s1972_s8 + $0xc] sm:$0xf] }
  0x28   : > { %v490_v49 = vsel %vm2026_vm2, %v485_v33, %v489_v22  ;;  %v670_v50 = vmul.bf16 %v2001_v40, %v1618_v29  ;;  %v434_v51 = vadd.bf16 %v340_v47, %v260_v32  ;;  %v671_v53 = vmul.bf16 %v2001_v40, %v1619_v38  ;;  %p1772_p0 = pneg %p1771_p13 }
  0x29   : > { %v499_v52 = vrot.slane %v498_v44, 4  ;;  %v685_v54 = vshrl.u32 %v668_v45, 16  ;;  %v597_v55 = vadd.bf16 %v490_v49, %v433_v48  ;;  %v688_v56 = vshll.u32 %v668_v45, 16 }
  0x2a   : > { %v694_v24 = vshll.u32 %v669_v46, 16  ;;  %v699_v57 = vshrl.u32 %v670_v50, 16  ;;  %v702_v59 = vshll.u32 %v670_v50, 16  ;;  %v708_v60 = vshll.u32 %v671_v53, 16  ;;  %v2088_v46 = vld [vmem:[%s1972_s8 + $0x1c] sm:$0x1] }
  0x2b   : > { %v504_v31 = vsel %vm2026_vm2, %v499_v52, %v503_v34  ;;  %v687_v58 = vrot.slane %v685_v54, 4  ;;  %v2055_v32 = vadd.bf16 %v624_v17, %v597_v55  ;;  %v690_v62 = vrot.slane %v688_v56, 5  ;;  %v1650_v56 = vld [vmem:[%s1972_s8 + $0x10] sm:$0xf] }
  0x2c   : > { %v598_v25 = vadd.bf16 %v504_v31, %v434_v51  ;;  %v696_v63 = vrot.slane %v694_v24, 5  ;;  %v701_v2 = vrot.slane %v699_v57, 4  ;;  %v704_v3 = vrot.slane %v702_v59, 5  ;;  %v1651_v59 = vld [vmem:[%s1972_s8 + $0x14] sm:$0x1] }
  0x2d   : > { %v710_v6 = vrot.slane %v708_v60, 5  ;;  %v2063_v7 = vcombine.low %v2003_v41, %v2003_v41  ;;  %v691_v14 = vor.u32 %v690_v62, %v687_v58  ;;  %v995_v15 = vmul.bf16 %v2059_v1, %v2007_v42  ;;  %v1652_v62 = vld [vmem:[%s1972_s8 + $0x1c] sm:$0xf] }
  0x2e   : > { %v633_v9 = vadd.bf16 %v625_v35, %v598_v25  ;;  %v996_v16 = vmul.bf16 %v2066_v8, %v2007_v42  ;;  %v705_v17 = vor.u32 %v704_v3, %v701_v2  ;;  %v1027_v26 = vshrl.u32 %v1957_v10, 16  ;;  %v1653_v3 = vld [vmem:[%s1972_s8 + $0x20] sm:$0x1] }
  0x2f   : > { %v831_v18 = vmul.bf16 %v2063_v7, %v1608_v5  ;;  %v832_v19 = vmul.bf16 %v2063_v7, %v1633_v61  ;;  %v833_v21 = vmul.bf16 %v2063_v7, %v1609_v12  ;;  %v692_v22 = vrot.slane %v691_v14, 4 }
  0x30   : > { %v834_v41 = vmul.bf16 %v2063_v7, %v1634_v0  ;;  %v2079_v28 = vcombine.low %v2010_v43, %v2010_v43  ;;  %v706_v29 = vrot.slane %v705_v17, 4  ;;  %v1667_v43 = vld [vmem:[%s1972_s8 + $0x10] sm:$0x1]  ;;  %v1028_v53 = vpack.i.b16 %v1027_v26, %v1027_v26 }
  0x31   : > { %v848_v30 = vshrl.u32 %v831_v18, 16  ;;  %v851_v33 = vshll.u32 %v831_v18, 16  ;;  %v857_v34 = vshll.u32 %v832_v19, 16  ;;  %v697_v5 = vsel %vm2026_vm2, %v692_v22, %v696_v63 }
  0x32   : > { %v862_v35 = vshrl.u32 %v833_v21, 16  ;;  %v865_v12 = vshll.u32 %v833_v21, 16  ;;  %v871_v38 = vshll.u32 %v834_v41, 16  ;;  %v711_v39 = vsel %vm2026_vm2, %v706_v29, %v710_v6 }
  0x33   : > { %v804_v10 = vadd.bf16 %v697_v5, %v2055_v32  ;;  %v850_v44 = vrot.slane %v848_v30, 4  ;;  %v853_v45 = vrot.slane %v851_v33, 5  ;;  %v805_v47 = vadd.bf16 %v711_v39, %v633_v9 }
  0x34   : > { %v859_v48 = vrot.slane %v857_v34, 5  ;;  %v864_v49 = vrot.slane %v862_v35, 4  ;;  %v867_v50 = vrot.slane %v865_v12, 5  ;;  %v873_v52 = vrot.slane %v871_v38, 5 }
  0x35   : > { %v854_v51 = vor.u32 %v853_v45, %v850_v44  ;;  %v1202_v54 = vmul.bf16 %v2079_v28, %v2059_v1  ;;  %v1203_v24 = vmul.bf16 %v2079_v28, %v1667_v43  ;;  %v1204_v57 = vmul.bf16 %v2079_v28, %v2066_v8 }
  0x36   : > { %v868_v55 = vor.u32 %v867_v50, %v864_v49  ;;  %v1205_v31 = vmul.bf16 %v2079_v28, %v2088_v46  ;;  %v1033_v60 = vrot.slane %v1028_v53, %v993_v23  ;;  %v276_v53 = vld [vmem:[%s1972_s8 + $0x38] sm:$0x1] }
  0x37   : > { %v855_v58 = vrot.slane %v854_v51, 4  ;;  %v1219_v61 = vshrl.u32 %v1202_v54, 16  ;;  %v1222_v25 = vshll.u32 %v1202_v54, 16  ;;  %v1228_v63 = vshll.u32 %v1203_v24, 16 }
  0x38   : > { %v869_v32 = vrot.slane %v868_v55, 4  ;;  %v1233_v0 = vshrl.u32 %v1204_v57, 16  ;;  %v1236_v1 = vshll.u32 %v1204_v57, 16  ;;  %v2105_v6 = vcombine.low %v1033_v60, %v1033_v60  ;;  %v277_v57 = vld [vmem:[%s1972_s8 + $0x40] sm:$0xf] }
  0x39   : > { %v860_v2 = vsel %vm2026_vm2, %v855_v58, %v859_v48  ;;  %v1221_v9 = vrot.slane %v1219_v61, 4  ;;  %v1224_v14 = vrot.slane %v1222_v25, 5  ;;  %v1230_v23 = vrot.slane %v1228_v63, 5  ;;  %v275_v48 = vld [vmem:[%s1972_s8 + $0x34] sm:$0xf] }
  0x3a   : > { %v874_v17 = vsel %vm2026_vm2, %v869_v32, %v873_v52  ;;  %v967_v4 = vadd.bf16 %v860_v2, %v804_v10  ;;  %v1235_v18 = vrot.slane %v1233_v0, 4  ;;  %v1038_v21 = vmul.bf16 %v2105_v6, %v1650_v56  ;;  %v278_v58 = vld [vmem:[%s1972_s8 + $0x44] sm:$0x1] }
  0x3b   : > { %v968_v19 = vadd.bf16 %v874_v17, %v805_v47  ;;  %v1039_v22 = vmul.bf16 %v2105_v6, %v1651_v59  ;;  %v1040_v41 = vmul.bf16 %v2105_v6, %v1652_v62  ;;  %v1041_v29 = vmul.bf16 %v2105_v6, %v1653_v3  ;;  %v2120_v47 = vld [vmem:[%s1972_s8 + $0x30] sm:$0xf] }
  0x3c   : > { %v1003_v26 = vadd.bf16 %v995_v15, %v967_v4  ;;  %v1225_v30 = vor.u32 %v1224_v14, %v1221_v9  ;;  %v1238_v33 = vrot.slane %v1236_v1, 5  ;;  %v1055_v5 = vshrl.u32 %v1038_v21, 16  ;;  %v1346_v15 = vld [vmem:[%s2471_s2] sm:$0x1] }
  0x3d   : > { %v1004_v34 = vadd.bf16 %v996_v16, %v968_v19  ;;  %v1058_v35 = vshll.u32 %v1038_v21, 16  ;;  %v1064_v12 = vshll.u32 %v1039_v22, 16  ;;  %v1069_v38 = vshrl.u32 %v1040_v41, 16  ;;  %v2123_v16 = vld [vmem:[%s1972_s8 + $0x3c] sm:$0xf] }
  0x3e   : > { %v1072_v39 = vshll.u32 %v1040_v41, 16  ;;  %v1078_v10 = vshll.u32 %v1041_v29, 16  ;;  %v1226_v44 = vrot.slane %v1225_v30, 4  ;;  %v1057_v45 = vrot.slane %v1055_v5, 4  ;;  %v445_v21 = vld [vmem:[%s1972_s8 + $0x34] sm:$0x1] }
  0x3f   : > { %v1060_v43 = vrot.slane %v1058_v35, 5  ;;  %v1066_v46 = vrot.slane %v1064_v12, 5  ;;  %v1239_v8 = vor.u32 %v1238_v33, %v1235_v18  ;;  %v1071_v49 = vrot.slane %v1069_v38, 4  ;;  %v446_v33 = vld [vmem:[%s1972_s8 + $0x40] sm:$0x1] }
  0x40   : > { %v1074_v50 = vrot.slane %v1072_v39, 5  ;;  %v1080_v51 = vrot.slane %v1078_v10, 5  ;;  %v1231_v52 = vsel %vm2026_vm2, %v1226_v44, %v1230_v23  ;;  %v1242_v56 = vshll.u32 %v1205_v31, 16 }
  0x41   : > { %v1061_v54 = vor.u32 %v1060_v43, %v1057_v45  ;;  %v1240_v55 = vrot.slane %v1239_v8, 4  ;;  %v1348_v24 = vpack.i.b16 %v1346_v15, %v1346_v15  ;;  %v263_v60 = vmul.bf16 %v1975_v20, %v2120_v47 }
  0x42   : > { %v1075_v59 = vor.u32 %v1074_v50, %v1071_v49  ;;  %v264_v61 = vmul.bf16 %v1975_v20, %v2123_v16  ;;  %v302_v25 = vmul.bf16 %v1995_v36, %v275_v48  ;;  %v1244_v62 = vrot.slane %v1242_v56, 5 }
  0x43   : > { %v1062_v32 = vrot.slane %v1061_v54, 4  ;;  %v2137_v63 = vrot.slane %v1348_v24, %v1960_v11  ;;  %v303_v31 = vmul.bf16 %v1995_v36, %v276_v53  ;;  %v304_v1 = vmul.bf16 %v1995_v36, %v277_v57  ;;  %v1612_v57 = vld [vmem:[%s1972_s8 + $0x9c] sm:$0xf] }
  0x44   : > { %v1076_v0 = vrot.slane %v1075_v59, 4  ;;  %v305_v2 = vmul.bf16 %v1995_v36, %v278_v58  ;;  %v370_v3 = vshrl.u32 %v302_v25, 16  ;;  %v1245_v14 = vsel %vm2026_vm2, %v1240_v55, %v1244_v62  ;;  %v1613_v58 = vld [vmem:[%s1972_s8 + $0xa8] sm:$0xf]  ;;  %v1624_v59 = vld [vmem:[%s1972_s8 + $0xa0] sm:$0xf] }
  0x45   : > { %v1067_v9 = vsel %vm2026_vm2, %v1062_v32, %v1066_v46  ;;  %v373_v17 = vshll.u32 %v302_v25, 16  ;;  %v379_v4 = vshll.u32 %v303_v31, 16  ;;  %v384_v19 = vshrl.u32 %v304_v1, 16 }
  0x46   : > { %v1081_v11 = vsel %vm2026_vm2, %v1076_v0, %v1080_v51  ;;  %v1174_v23 = vadd.bf16 %v1067_v9, %v1003_v26  ;;  %v372_v18 = vrot.slane %v370_v3, 4  ;;  %v387_v30 = vshll.u32 %v304_v1, 16  ;;  %v1625_v0 = vld [vmem:[%s1972_s8 + $0xa4] sm:$0x1] }
  0x47   : > { %v1175_v22 = vadd.bf16 %v1081_v11, %v1004_v34  ;;  %v375_v41 = vrot.slane %v373_v17, 5  ;;  %v381_v29 = vrot.slane %v379_v4, 5  ;;  %v386_v35 = vrot.slane %v384_v19, 4  ;;  %v1627_v17 = vld [vmem:[%s1972_s8 + $0xb0] sm:$0x1] }
  0x48   : > { %v1338_v5 = vadd.bf16 %v1231_v52, %v1174_v23  ;;  %v393_v12 = vshll.u32 %v305_v2, 16  ;;  %v469_v38 = vmul.bf16 %v1997_v37, %v2120_v47  ;;  %v389_v44 = vrot.slane %v387_v30, 5 }
  0x49   : > { %v1339_v39 = vadd.bf16 %v1245_v14, %v1175_v22  ;;  %v376_v10 = vor.u32 %v375_v41, %v372_v18  ;;  %v470_v26 = vmul.bf16 %v1997_v37, %v445_v21  ;;  %v471_v34 = vmul.bf16 %v1997_v37, %v2123_v16  ;;  %v1626_v14 = vld [vmem:[%s1972_s8 + $0xac] sm:$0xf] }
  0x4a   : > { %v1354_v15 = vadd.bf16 %v2137_v63, %v1338_v5  ;;  %v395_v45 = vrot.slane %v393_v12, 5  ;;  %v472_v43 = vmul.bf16 %v1997_v37, %v446_v33  ;;  %v390_v47 = vor.u32 %v389_v44, %v386_v35  ;;  %v1637_v44 = vld [vmem:[%s1972_s8 + $0xa0] sm:$0x1] }
  0x4b   : > { %v1355_v46 = vadd.bf16 %v2137_v63, %v1339_v39  ;;  %v377_v8 = vrot.slane %v376_v10, 4  ;;  %v534_v48 = vshrl.u32 %v469_v38, 16  ;;  %v1849_v49 = vmov 0  }
  0x4c   : > { %v1362_v50 = vmax.bf16 %v1849_v49, %v1354_v15  ;;  %v537_v51 = vshll.u32 %v469_v38, 16  ;;  %v543_v52 = vshll.u32 %v470_v26, 16  ;;  %v548_v53 = vshrl.u32 %v471_v34, 16 }
  0x4d   : > { %v1363_v54 = vmax.bf16 %v1849_v49, %v1355_v46  ;;  %v382_v55 = vsel %vm2026_vm2, %v377_v8, %v381_v29  ;;  %v391_v56 = vrot.slane %v390_v47, 4  ;;  %v536_v24 = vrot.slane %v534_v48, 4 }
  0x4e   : > { %v437_v25 = vadd.bf16 %v382_v55, %v263_v60  ;;  %v539_v32 = vrot.slane %v537_v51, 5  ;;  %v545_v62 = vrot.slane %v543_v52, 5  ;;  %v550_v31 = vrot.slane %v548_v53, 4 }
  0x4f   : > { %v1677_v1 = vcombine.low %v1362_v50, %v1363_v54  ;;  %v396_v2 = vsel %vm2026_vm2, %v391_v56, %v395_v45  ;;  %v551_v3 = vshll.u32 %v471_v34, 16  ;;  %v557_v9 = vshll.u32 %v472_v43, 16  ;;  %v1638_v43 = vld [vmem:[%s1972_s8 + $0xac] sm:$0x1] }
  0x50   : > { %v438_v4 = vadd.bf16 %v396_v2, %v264_v61  ;;  %v540_v11 = vor.u32 %v539_v32, %v536_v24  ;;  %v628_v23 = vmul.bf16 %v1612_v57, %v1986_v27  ;;  %v629_v60 = vmul.bf16 %v1613_v58, %v1986_v27  ;;  %v1646_v2 = vld [vmem:[%s1972_s8 + $0x3c] sm:$0xf] }
  0x51   : > { %1699 = vmatprep.mubr.msk.bf16.mxu0 %vm1405_vm3, %v1677_v1  ;;  %v553_v18 = vrot.slane %v551_v3, 5  ;;  %v559_v19 = vrot.slane %v557_v9, 5  ;;  %v676_v21 = vmul.bf16 %v2001_v40, %v1624_v59  ;;  %v677_v22 = vmul.bf16 %v2001_v40, %v1625_v0  ;;  %v1658_v3 = vld [vmem:[%s1972_s8 + $0x40] sm:$0xf] }
  0x52   : > { %v541_v41 = vrot.slane %v540_v11, 4  ;;  %v678_v29 = vmul.bf16 %v2001_v40, %v1626_v14  ;;  %v679_v16 = vmul.bf16 %v2001_v40, %v1627_v17  ;;  %v839_v61 = vmul.bf16 %v2063_v7, %v1612_v57 }
  0x53   : > { %v554_v30 = vor.u32 %v553_v18, %v550_v31  ;;  %v741_v33 = vshrl.u32 %v676_v21, 16  ;;  %v744_v5 = vshll.u32 %v676_v21, 16  ;;  %v750_v35 = vshll.u32 %v677_v22, 16  ;;  %v1661_v21 = vld [vmem:[%s1972_s8 + $0x50] sm:$0x1] }
  0x54   : > { %v546_v12 = vsel %vm2026_vm2, %v541_v41, %v545_v62  ;;  %v755_v38 = vshrl.u32 %v678_v29, 16  ;;  %v758_v39 = vshll.u32 %v678_v29, 16  ;;  %v764_v10 = vshll.u32 %v679_v16, 16  ;;  %v1647_v16 = vld [vmem:[%s1972_s8 + $0x48] sm:$0xf] }
  0x55   : > { %v555_v26 = vrot.slane %v554_v30, 4  ;;  %v601_v15 = vadd.bf16 %v546_v12, %v437_v25  ;;  %v743_v45 = vrot.slane %v741_v33, 4  ;;  %v746_v34 = vrot.slane %v744_v5, 5 }
  0x56   : > { %v752_v46 = vrot.slane %v750_v35, 5  ;;  %v757_v8 = vrot.slane %v755_v38, 4  ;;  %v760_v47 = vrot.slane %v758_v39, 5  ;;  %v766_v48 = vrot.slane %v764_v10, 5 }
  0x57   : > { %v560_v50 = vsel %vm2026_vm2, %v555_v26, %v559_v19  ;;  %v636_v51 = vadd.bf16 %v628_v23, %v601_v15  ;;  %v747_v52 = vor.u32 %v746_v34, %v743_v45  ;;  %v840_v53 = vmul.bf16 %v2063_v7, %v1637_v44  ;;  %v1660_v19 = vld [vmem:[%s1972_s8 + $0x4c] sm:$0xf] }
  0x58   : > { %v602_v54 = vadd.bf16 %v560_v50, %v438_v4  ;;  %v761_v55 = vor.u32 %v760_v47, %v757_v8  ;;  %v841_v56 = vmul.bf16 %v2063_v7, %v1613_v58  ;;  %v842_v24 = vmul.bf16 %v2063_v7, %v1638_v43  ;;  %v1659_v4 = vld [vmem:[%s1972_s8 + $0x44] sm:$0x1] }
  0x59   : > { %v748_v57 = vrot.slane %v747_v52, 4  ;;  %v904_v59 = vshrl.u32 %v839_v61, 16  ;;  %v907_v25 = vshll.u32 %v839_v61, 16  ;;  %v913_v32 = vshll.u32 %v840_v53, 16  ;;  %v1671_v52 = vld [vmem:[%s1972_s8 + $0x40] sm:$0x1] }
  0x5a   : > { %v637_v62 = vadd.bf16 %v629_v60, %v602_v54  ;;  %v762_v31 = vrot.slane %v761_v55, 4  ;;  %v918_v0 = vshrl.u32 %v841_v56, 16  ;;  %v921_v1 = vshll.u32 %v841_v56, 16 }
  0x5b   : > { %v753_v9 = vsel %vm2026_vm2, %v748_v57, %v752_v46  ;;  %v906_v58 = vrot.slane %v904_v59, 4  ;;  %v909_v14 = vrot.slane %v907_v25, 5  ;;  %v915_v17 = vrot.slane %v913_v32, 5 }
  0x5c   : > { %v767_v11 = vsel %vm2026_vm2, %v762_v31, %v766_v48  ;;  %v808_v23 = vadd.bf16 %v753_v9, %v636_v51  ;;  %v920_v18 = vrot.slane %v918_v0, 4  ;;  %v923_v60 = vrot.slane %v921_v1, 5 }
  0x5d   : > { %v809_v22 = vadd.bf16 %v767_v11, %v637_v62  ;;  %v910_v41 = vor.u32 %v909_v14, %v906_v58  ;;  %v927_v29 = vshll.u32 %v842_v24, 16  ;;  %v999_v61 = vmul.bf16 %v1646_v2, %v2007_v42  ;;  %v1672_v24 = vld [vmem:[%s1972_s8 + $0x4c] sm:$0x1] }
  0x5e   : > { %v924_v30 = vor.u32 %v923_v60, %v920_v18  ;;  %v1000_v33 = vmul.bf16 %v1647_v16, %v2007_v42  ;;  %v1046_v5 = vmul.bf16 %v2105_v6, %v1658_v3  ;;  %v1047_v35 = vmul.bf16 %v2105_v6, %v1659_v4  ;;  %v271_v18 = vld [vmem:[%s1972_s8 + $0x1c] sm:$0xf] }
  0x5f   : > { %v911_v12 = vrot.slane %v910_v41, 4  ;;  %v929_v38 = vrot.slane %v927_v29, 5  ;;  %v1048_v39 = vmul.bf16 %v2105_v6, %v1660_v19  ;;  %v1049_v10 = vmul.bf16 %v2105_v6, %v1661_v21 }
  0x60   : > { %v925_v44 = vrot.slane %v924_v30, 4  ;;  %v1111_v26 = vshrl.u32 %v1046_v5, 16  ;;  %v1114_v15 = vshll.u32 %v1046_v5, 16  ;;  %v1120_v45 = vshll.u32 %v1047_v35, 16  ;;  %v273_v30 = vld [vmem:[%s1972_s8 + $0x28] sm:$0xf] }
  0x61   : > { %v916_v34 = vsel %vm2026_vm2, %v911_v12, %v915_v17  ;;  %v1125_v43 = vshrl.u32 %v1048_v39, 16  ;;  %v1128_v46 = vshll.u32 %v1048_v39, 16  ;;  %v1134_v8 = vshll.u32 %v1049_v10, 16  ;;  %v245_v39 = vld [vmem:[%s1972_s8 + $0x18] sm:$0xf] }
  0x62   : > { %v930_v47 = vsel %vm2026_vm2, %v925_v44, %v929_v38  ;;  %v971_v48 = vadd.bf16 %v916_v34, %v808_v23  ;;  %v1113_v50 = vrot.slane %v1111_v26, 4  ;;  %v1116_v51 = vrot.slane %v1114_v15, 5  ;;  %v246_v10 = vld [vmem:[%s1972_s8 + $0x24] sm:$0xf] }
  0x63   : > { %v972_v53 = vadd.bf16 %v930_v47, %v809_v22  ;;  %v1122_v54 = vrot.slane %v1120_v45, 5  ;;  %v1127_v55 = vrot.slane %v1125_v43, 4  ;;  %v1130_v56 = vrot.slane %v1128_v46, 5  ;;  %v272_v22 = vld [vmem:[%s1972_s8 + $0x20] sm:$0x1] }
  0x64   : > { %v1007_v57 = vadd.bf16 %v999_v61, %v971_v48  ;;  %v1117_v59 = vor.u32 %v1116_v51, %v1113_v50  ;;  %v1136_v25 = vrot.slane %v1134_v8, 5  ;;  %v1210_v32 = vmul.bf16 %v2079_v28, %v1646_v2 }
  0x65   : > { %v1008_v62 = vadd.bf16 %v1000_v33, %v972_v53  ;;  %v1131_v31 = vor.u32 %v1130_v56, %v1127_v55  ;;  %v1211_v0 = vmul.bf16 %v2079_v28, %v1671_v52  ;;  %v1212_v1 = vmul.bf16 %v2079_v28, %v1647_v16  ;;  %v274_v33 = vld [vmem:[%s1972_s8 + $0x2c] sm:$0x1]  ;;  %v443_v56 = vld [vmem:[%s1972_s8 + $0x1c] sm:$0x1] }
  0x66   : > { %v1118_v3 = vrot.slane %v1117_v59, 4  ;;  %v1213_v9 = vmul.bf16 %v2079_v28, %v1672_v24  ;;  %v1275_v58 = vshrl.u32 %v1210_v32, 16  ;;  %v1278_v14 = vshll.u32 %v1210_v32, 16  ;;  %v444_v32 = vld [vmem:[%s1972_s8 + $0x28] sm:$0x1] }
  0x67   : > { %v1132_v17 = vrot.slane %v1131_v31, 4  ;;  %v1284_v4 = vshll.u32 %v1211_v0, 16  ;;  %v1289_v11 = vshrl.u32 %v1212_v1, 16  ;;  %v1292_v23 = vshll.u32 %v1212_v1, 16 }
  0x68   : > { %v1123_v2 = vsel %vm2026_vm2, %v1118_v3, %v1122_v54  ;;  %v1277_v60 = vrot.slane %v1275_v58, 4  ;;  %v1280_v19 = vrot.slane %v1278_v14, 5  ;;  %v1298_v21 = vshll.u32 %v1213_v9, 16 }
  0x69   : > { %v1137_v41 = vsel %vm2026_vm2, %v1132_v17, %v1136_v25  ;;  %v1178_v29 = vadd.bf16 %v1123_v2, %v1007_v57  ;;  %v1286_v16 = vrot.slane %v1284_v4, 5  ;;  %v1291_v61 = vrot.slane %v1289_v11, 4 }
  0x6a   : > { %v1179_v5 = vadd.bf16 %v1137_v41, %v1008_v62  ;;  %v1281_v35 = vor.u32 %v1280_v19, %v1277_v60  ;;  %v1294_v12 = vrot.slane %v1292_v23, 5  ;;  %v1300_v38 = vrot.slane %v1298_v21, 5 }
  0x6b   : > { %v261_v44 = vmul.bf16 %v1975_v20, %v245_v39  ;;  %v262_v26 = vmul.bf16 %v1975_v20, %v246_v10  ;;  %v298_v15 = vmul.bf16 %v1995_v36, %v271_v18  ;;  %v299_v45 = vmul.bf16 %v1995_v36, %v272_v22 }
  0x6c   : > { %v1282_v34 = vrot.slane %v1281_v35, 4  ;;  %v1295_v43 = vor.u32 %v1294_v12, %v1291_v61  ;;  %v300_v46 = vmul.bf16 %v1995_v36, %v273_v30  ;;  %v301_v8 = vmul.bf16 %v1995_v36, %v274_v33  ;;  %v1620_v35 = vld [vmem:[%s1972_s8 + $0x88] sm:$0xf] }
  0x6d   : > { %v342_v47 = vshrl.u32 %v298_v15, 16  ;;  %v345_v48 = vshll.u32 %v298_v15, 16  ;;  %v351_v50 = vshll.u32 %v299_v45, 16  ;;  %v465_v51 = vmul.bf16 %v1997_v37, %v245_v39  ;;  %v1621_v15 = vld [vmem:[%s1972_s8 + $0x8c] sm:$0x1] }
  0x6e   : > { %v1287_v52 = vsel %vm2026_vm2, %v1282_v34, %v1286_v16  ;;  %v1296_v53 = vrot.slane %v1295_v43, 4  ;;  %v356_v54 = vshrl.u32 %v300_v46, 16  ;;  %v359_v55 = vshll.u32 %v300_v46, 16  ;;  %v1622_v45 = vld [vmem:[%s1972_s8 + $0x94] sm:$0xf] }
  0x6f   : > { %v1342_v24 = vadd.bf16 %v1287_v52, %v1178_v29  ;;  %v344_v57 = vrot.slane %v342_v47, 4  ;;  %v347_v59 = vrot.slane %v345_v48, 5  ;;  %v353_v25 = vrot.slane %v351_v50, 5  ;;  %v1611_v47 = vld [vmem:[%s1972_s8 + $0x90] sm:$0xf] }
  0x70   : > { %v1301_v62 = vsel %vm2026_vm2, %v1296_v53, %v1300_v38  ;;  %v358_v31 = vrot.slane %v356_v54, 4  ;;  %v361_v0 = vrot.slane %v359_v55, 5  ;;  %v365_v1 = vshll.u32 %v301_v8, 16  ;;  %v1623_v48 = vld [vmem:[%s1972_s8 + $0x98] sm:$0x1] }
  0x71   : > { %v1343_v3 = vadd.bf16 %v1301_v62, %v1179_v5  ;;  %v1358_v9 = vadd.bf16 %v2137_v63, %v1342_v24  ;;  %v348_v58 = vor.u32 %v347_v59, %v344_v57  ;;  %v466_v14 = vmul.bf16 %v1997_v37, %v443_v56  ;;  %v1610_v5 = vld [vmem:[%s1972_s8 + $0x84] sm:$0xf] }
  0x72   : > { %v362_v17 = vor.u32 %v361_v0, %v358_v31  ;;  %v367_v4 = vrot.slane %v365_v1, 5  ;;  %v467_v11 = vmul.bf16 %v1997_v37, %v246_v10  ;;  %v468_v23 = vmul.bf16 %v1997_v37, %v444_v32 }
  0x73   : > { %v1359_v18 = vadd.bf16 %v2137_v63, %v1343_v3  ;;  %v1366_v2 = vmax.bf16 %v1849_v49, %v1358_v9  ;;  %v349_v60 = vrot.slane %v348_v58, 4  ;;  %v506_v19 = vshrl.u32 %v465_v51, 16  ;;  %v1635_v58 = vld [vmem:[%s1972_s8 + $0x88] sm:$0x1] }
  0x74   : > { %v363_v21 = vrot.slane %v362_v17, 4  ;;  %v509_v22 = vshll.u32 %v465_v51, 16  ;;  %v515_v41 = vshll.u32 %v466_v14, 16  ;;  %v520_v29 = vshrl.u32 %v467_v11, 16 }
  0x75   : > { %v1367_v16 = vmax.bf16 %v1849_v49, %v1359_v18  ;;  %v354_v61 = vsel %vm2026_vm2, %v349_v60, %v353_v25  ;;  %v508_v30 = vrot.slane %v506_v19, 4  ;;  %v523_v33 = vshll.u32 %v467_v11, 16 }
  0x76   : > { %v368_v12 = vsel %vm2026_vm2, %v363_v21, %v367_v4  ;;  %v435_v38 = vadd.bf16 %v354_v61, %v261_v44  ;;  %v511_v39 = vrot.slane %v509_v22, 5  ;;  %v517_v10 = vrot.slane %v515_v41, 5 }
  0x77   : > { %v1679_v34 = vcombine.low %v1366_v2, %v1367_v16  ;;  %v436_v43 = vadd.bf16 %v368_v12, %v262_v26  ;;  %v522_v46 = vrot.slane %v520_v29, 4  ;;  %v525_v8 = vrot.slane %v523_v33, 5 }
  0x78   : > { %v512_v50 = vor.u32 %v511_v39, %v508_v30  ;;  %v529_v51 = vshll.u32 %v468_v23, 16  ;;  %v626_v52 = vmul.bf16 %v1610_v5, %v1986_v27  ;;  %v627_v53 = vmul.bf16 %v1611_v47, %v1986_v27  ;;  %v1636_v23 = vld [vmem:[%s1972_s8 + $0x94] sm:$0x1] }
  0x79   : > { %1703 = vmatprep.mubr.msk.bf16.mxu1 %vm1405_vm3, %v1679_v34  ;;  %v526_v54 = vor.u32 %v525_v8, %v522_v46  ;;  %v672_v44 = vmul.bf16 %v2001_v40, %v1620_v35  ;;  %v673_v55 = vmul.bf16 %v2001_v40, %v1621_v15  ;;  %v674_v26 = vmul.bf16 %v2001_v40, %v1622_v45  ;;  %v1644_v34 = vld [vmem:[%s1972_s8 + $0x24] sm:$0xf] }
  0x7a   : > { %v513_v56 = vrot.slane %v512_v50, 4  ;;  %v531_v24 = vrot.slane %v529_v51, 5  ;;  %v675_v57 = vmul.bf16 %v2001_v40, %v1623_v48  ;;  %v835_v59 = vmul.bf16 %v2063_v7, %v1610_v5  ;;  %v1655_v50 = vld [vmem:[%s1972_s8 + $0x2c] sm:$0x1] }
  0x7b   : > { %v527_v25 = vrot.slane %v526_v54, 4  ;;  %v713_v32 = vshrl.u32 %v672_v44, 16  ;;  %v716_v62 = vshll.u32 %v672_v44, 16  ;;  %v722_v31 = vshll.u32 %v673_v55, 16  ;;  %v1656_v44 = vld [vmem:[%s1972_s8 + $0x34] sm:$0xf] }
  0x7c   : > { %v518_v0 = vsel %vm2026_vm2, %v513_v56, %v517_v10  ;;  %v727_v1 = vshrl.u32 %v674_v26, 16  ;;  %v730_v3 = vshll.u32 %v674_v26, 16  ;;  %v736_v9 = vshll.u32 %v675_v57, 16  ;;  %v1657_v55 = vld [vmem:[%s1972_s8 + $0x38] sm:$0x1] }
  0x7d   : > { %v532_v14 = vsel %vm2026_vm2, %v527_v25, %v531_v24  ;;  %v599_v17 = vadd.bf16 %v518_v0, %v435_v38  ;;  %v715_v4 = vrot.slane %v713_v32, 4  ;;  %v718_v11 = vrot.slane %v716_v62, 5  ;;  %v1645_v57 = vld [vmem:[%s1972_s8 + $0x30] sm:$0xf] }
  0x7e   : > { %v600_v18 = vadd.bf16 %v532_v14, %v436_v43  ;;  %v724_v2 = vrot.slane %v722_v31, 5  ;;  %v729_v60 = vrot.slane %v727_v1, 4  ;;  %v732_v19 = vrot.slane %v730_v3, 5  ;;  %v1654_v43 = vld [vmem:[%s1972_s8 + $0x28] sm:$0xf] }
  0x7f   : > { %v634_v21 = vadd.bf16 %v626_v52, %v599_v17  ;;  %v719_v22 = vor.u32 %v718_v11, %v715_v4  ;;  %v738_v41 = vrot.slane %v736_v9, 5  ;;  %v836_v29 = vmul.bf16 %v2063_v7, %v1635_v58 }
  0x80   : > { %v635_v16 = vadd.bf16 %v627_v53, %v600_v18  ;;  %v733_v61 = vor.u32 %v732_v19, %v729_v60  ;;  %v837_v30 = vmul.bf16 %v2063_v7, %v1611_v47  ;;  %v838_v33 = vmul.bf16 %v2063_v7, %v1636_v23  ;;  %v1669_v60 = vld [vmem:[%s1972_s8 + $0x28] sm:$0x1] }
  0x81   : > { %v720_v5 = vrot.slane %v719_v22, 4  ;;  %v876_v35 = vshrl.u32 %v835_v59, 16  ;;  %v879_v12 = vshll.u32 %v835_v59, 16  ;;  %v885_v38 = vshll.u32 %v836_v29, 16  ;;  %v1670_v29 = vld [vmem:[%s1972_s8 + $0x34] sm:$0x1] }
  0x82   : > { %v734_v39 = vrot.slane %v733_v61, 4  ;;  %v890_v10 = vshrl.u32 %v837_v30, 16  ;;  %v893_v15 = vshll.u32 %v837_v30, 16  ;;  %v899_v45 = vshll.u32 %v838_v33, 16 }
  0x83   : > { %v725_v46 = vsel %vm2026_vm2, %v720_v5, %v724_v2  ;;  %v878_v8 = vrot.slane %v876_v35, 4  ;;  %v881_v47 = vrot.slane %v879_v12, 5  ;;  %v887_v48 = vrot.slane %v885_v38, 5 }
  0x84   : > { %v739_v51 = vsel %vm2026_vm2, %v734_v39, %v738_v41  ;;  %v806_v52 = vadd.bf16 %v725_v46, %v634_v21  ;;  %v892_v53 = vrot.slane %v890_v10, 4  ;;  %v895_v54 = vrot.slane %v893_v15, 5 }
  0x85   : > { %v807_v26 = vadd.bf16 %v739_v51, %v635_v16  ;;  %v882_v56 = vor.u32 %v881_v47, %v878_v8  ;;  %v901_v24 = vrot.slane %v899_v45, 5  ;;  %v997_v59 = vmul.bf16 %v1644_v34, %v2007_v42 }
  0x86   : > { %v896_v25 = vor.u32 %v895_v54, %v892_v53  ;;  %v998_v32 = vmul.bf16 %v1645_v57, %v2007_v42  ;;  %v1042_v62 = vmul.bf16 %v2105_v6, %v1654_v43  ;;  %v1043_v31 = vmul.bf16 %v2105_v6, %v1655_v50  ;;  %v279_v53 = vld [vmem:[%s1972_s8 + $0x4c] sm:$0xf] }
  0x87   : > { %v883_v0 = vrot.slane %v882_v56, 4  ;;  %v1044_v1 = vmul.bf16 %v2105_v6, %v1656_v44  ;;  %v1045_v3 = vmul.bf16 %v2105_v6, %v1657_v55  ;;  %v1206_v9 = vmul.bf16 %v2079_v28, %v1644_v34  ;;  %v280_v56 = vld [vmem:[%s1972_s8 + $0x50] sm:$0x1] }
  0x88   : > { %v897_v58 = vrot.slane %v896_v25, 4  ;;  %v1083_v14 = vshrl.u32 %v1042_v62, 16  ;;  %v1086_v17 = vshll.u32 %v1042_v62, 16  ;;  %v1092_v4 = vshll.u32 %v1043_v31, 16  ;;  %v282_v62 = vld [vmem:[%s1972_s8 + $0x5c] sm:$0x1] }
  0x89   : > { %v888_v11 = vsel %vm2026_vm2, %v883_v0, %v887_v48  ;;  %v1097_v23 = vshrl.u32 %v1044_v1, 16  ;;  %v1100_v18 = vshll.u32 %v1044_v1, 16  ;;  %v1106_v2 = vshll.u32 %v1045_v3, 16  ;;  %v250_v3 = vld [vmem:[%s1972_s8 + $0x54] sm:$0xf] }
  0x8a   : > { %v902_v19 = vsel %vm2026_vm2, %v897_v58, %v901_v24  ;;  %v969_v21 = vadd.bf16 %v888_v11, %v806_v52  ;;  %v1085_v22 = vrot.slane %v1083_v14, 4  ;;  %v1088_v41 = vrot.slane %v1086_v17, 5  ;;  %v2300_v52 = vld [vmem:[%s1972_s8 + $0x48] sm:$0xf] }
  0x8b   : > { %v970_v16 = vadd.bf16 %v902_v19, %v807_v26  ;;  %v1094_v61 = vrot.slane %v1092_v4, 5  ;;  %v1099_v30 = vrot.slane %v1097_v23, 4  ;;  %v1102_v33 = vrot.slane %v1100_v18, 5 }
  0x8c   : > { %v1005_v5 = vadd.bf16 %v997_v59, %v969_v21  ;;  %v1089_v35 = vor.u32 %v1088_v41, %v1085_v22  ;;  %v1108_v12 = vrot.slane %v1106_v2, 5  ;;  %v1207_v38 = vmul.bf16 %v2079_v28, %v1669_v60 }
  0x8d   : > { %v1006_v39 = vadd.bf16 %v998_v32, %v970_v16  ;;  %v1103_v10 = vor.u32 %v1102_v33, %v1099_v30  ;;  %v1208_v15 = vmul.bf16 %v2079_v28, %v1645_v57  ;;  %v1209_v45 = vmul.bf16 %v2079_v28, %v1670_v29  ;;  %v281_v32 = vld [vmem:[%s1972_s8 + $0x58] sm:$0xf] }
  0x8e   : > { %v1090_v34 = vrot.slane %v1089_v35, 4  ;;  %v1247_v43 = vshrl.u32 %v1206_v9, 16  ;;  %v1250_v46 = vshll.u32 %v1206_v9, 16  ;;  %v1256_v8 = vshll.u32 %v1207_v38, 16  ;;  %v448_v35 = vld [vmem:[%s1972_s8 + $0x58] sm:$0x1] }
  0x8f   : > { %v1104_v47 = vrot.slane %v1103_v10, 4  ;;  %v1261_v48 = vshrl.u32 %v1208_v15, 16  ;;  %v1264_v50 = vshll.u32 %v1208_v15, 16  ;;  %v1270_v51 = vshll.u32 %v1209_v45, 16 }
  0x90   : > { %v1095_v54 = vsel %vm2026_vm2, %v1090_v34, %v1094_v61  ;;  %v1249_v44 = vrot.slane %v1247_v43, 4  ;;  %v1252_v55 = vrot.slane %v1250_v46, 5  ;;  %v1258_v26 = vrot.slane %v1256_v8, 5  ;;  %v447_v61 = vld [vmem:[%s1972_s8 + $0x4c] sm:$0x1] }
  0x91   : > { %v1109_v24 = vsel %vm2026_vm2, %v1104_v47, %v1108_v12  ;;  %v1176_v57 = vadd.bf16 %v1095_v54, %v1005_v5  ;;  %v1263_v59 = vrot.slane %v1261_v48, 4  ;;  %v1266_v25 = vrot.slane %v1264_v50, 5 }
  0x92   : > { %v1177_v31 = vadd.bf16 %v1109_v24, %v1006_v39  ;;  %v1253_v0 = vor.u32 %v1252_v55, %v1249_v44  ;;  %v1272_v1 = vrot.slane %v1270_v51, 5  ;;  %v265_v9 = vmul.bf16 %v1975_v20, %v2300_v52 }
  0x93   : > { %v1267_v58 = vor.u32 %v1266_v25, %v1263_v59  ;;  %v266_v14 = vmul.bf16 %v1975_v20, %v250_v3  ;;  %v306_v17 = vmul.bf16 %v1995_v36, %v279_v53  ;;  %v307_v4 = vmul.bf16 %v1995_v36, %v280_v56  ;;  %v1614_v59 = vld [vmem:[%s1972_s8 + $0xb4] sm:$0xf]  ;;  %v1628_v25 = vld [vmem:[%s1972_s8 + $0xb8] sm:$0xf] }
  0x94   : > { %v1254_v11 = vrot.slane %v1253_v0, 4  ;;  %v308_v23 = vmul.bf16 %v1995_v36, %v281_v32  ;;  %v309_v18 = vmul.bf16 %v1995_v36, %v282_v62  ;;  %v473_v2 = vmul.bf16 %v1997_v37, %v2300_v52 }
  0x95   : > { %v1268_v60 = vrot.slane %v1267_v58, 4  ;;  %v398_v19 = vshrl.u32 %v306_v17, 16  ;;  %v401_v21 = vshll.u32 %v306_v17, 16  ;;  %v407_v22 = vshll.u32 %v307_v4, 16 }
  0x96   : > { %v1259_v20 = vsel %vm2026_vm2, %v1254_v11, %v1258_v26  ;;  %v412_v41 = vshrl.u32 %v308_v23, 16  ;;  %v415_v29 = vshll.u32 %v308_v23, 16  ;;  %v421_v16 = vshll.u32 %v309_v18, 16  ;;  %v1615_v23 = vld [vmem:[%s1972_s8 + $0xc0] sm:$0xf] }
  0x97   : > { %v1273_v30 = vsel %vm2026_vm2, %v1268_v60, %v1272_v1  ;;  %v1340_v33 = vadd.bf16 %v1259_v20, %v1176_v57  ;;  %v400_v5 = vrot.slane %v398_v19, 4  ;;  %v403_v36 = vrot.slane %v401_v21, 5  ;;  %v1629_v1 = vld [vmem:[%s1972_s8 + $0xbc] sm:$0x1]  ;;  %v1631_v18 = vld [vmem:[%s1972_s8 + $0xc8] sm:$0x1] }
  0x98   : > { %v1341_v12 = vadd.bf16 %v1273_v30, %v1177_v31  ;;  %v409_v38 = vrot.slane %v407_v22, 5  ;;  %v414_v39 = vrot.slane %v412_v41, 4  ;;  %v417_v10 = vrot.slane %v415_v29, 5 }
  0x99   : > { %v1356_v15 = vadd.bf16 %v2137_v63, %v1340_v33  ;;  %v404_v45 = vor.u32 %v403_v36, %v400_v5  ;;  %v423_v34 = vrot.slane %v421_v16, 5  ;;  %v474_v43 = vmul.bf16 %v1997_v37, %v447_v61 }
  0x9a   : > { %v1357_v46 = vadd.bf16 %v2137_v63, %v1341_v12  ;;  %v418_v8 = vor.u32 %v417_v10, %v414_v39  ;;  %v475_v47 = vmul.bf16 %v1997_v37, %v250_v3  ;;  %v476_v48 = vmul.bf16 %v1997_v37, %v448_v35  ;;  %v1630_v3 = vld [vmem:[%s1972_s8 + $0xc4] sm:$0xf]  ;;  %v1639_v39 = vld [vmem:[%s1972_s8 + $0xb8] sm:$0x1] }
  0x9b   : > { %v1364_v50 = vmax.bf16 %v1849_v49, %v1356_v15  ;;  %v405_v51 = vrot.slane %v404_v45, 4  ;;  %v562_v52 = vshrl.u32 %v473_v2, 16  ;;  %v565_v53 = vshll.u32 %v473_v2, 16 }
  0x9c   : > { %v1365_v54 = vmax.bf16 %v1849_v49, %v1357_v46  ;;  %v419_v44 = vrot.slane %v418_v8, 4  ;;  %v571_v55 = vshll.u32 %v474_v43, 16  ;;  %v576_v26 = vshrl.u32 %v475_v47, 16 }
  0x9d   : > { %v410_v56 = vsel %vm2026_vm2, %v405_v51, %v409_v38  ;;  %v564_v24 = vrot.slane %v562_v52, 4  ;;  %v567_v57 = vrot.slane %v565_v53, 5  ;;  %v579_v37 = vshll.u32 %v475_v47, 16 }
  0x9e   : > { %v1678_v32 = vcombine.low %v1364_v50, %v1365_v54  ;;  %v424_v62 = vsel %vm2026_vm2, %v419_v44, %v423_v34  ;;  %v439_v31 = vadd.bf16 %v410_v56, %v265_v9  ;;  %v573_v0 = vrot.slane %v571_v55, 5  ;;  %v1640_v34 = vld [vmem:[%s1972_s8 + $0xc4] sm:$0x1] }
  0x9f   : > { %v440_v58 = vadd.bf16 %v424_v62, %v266_v14  ;;  %v568_v17 = vor.u32 %v567_v57, %v564_v24  ;;  %v578_v4 = vrot.slane %v576_v26, 4  ;;  %v581_v11 = vrot.slane %v579_v37, 5  ;;  %v1662_v37 = vld [vmem:[%s1972_s8 + $0x58] sm:$0xf] }
  0xa0   : > { %1700 = vmatmul.mubr.msk.bf16.vlgmr.msra.gmra.mrb[0].mxu0 %vm1405_vm3, %v1678_v32  ;;  %v585_v2 = vshll.u32 %v476_v48, 16  ;;  %v630_v60 = vmul.bf16 %v1614_v59, %v1986_v27  ;;  %v631_v19 = vmul.bf16 %v1615_v23, %v1986_v27  ;;  %v680_v21 = vmul.bf16 %v2001_v40, %v1628_v25 }
  0xa1   : > { %v569_v22 = vrot.slane %v568_v17, 4  ;;  %v582_v9 = vor.u32 %v581_v11, %v578_v4  ;;  %v681_v20 = vmul.bf16 %v2001_v40, %v1629_v1  ;;  %v682_v14 = vmul.bf16 %v2001_v40, %v1630_v3  ;;  %v1664_v17 = vld [vmem:[%s1972_s8 + $0x64] sm:$0xf] }
  0xa2   : > { %v587_v41 = vrot.slane %v585_v2, 5  ;;  %v683_v29 = vmul.bf16 %v2001_v40, %v1631_v18  ;;  %v769_v16 = vshrl.u32 %v680_v21, 16  ;;  %v772_v61 = vshll.u32 %v680_v21, 16  ;;  %v1673_v2 = vld [vmem:[%s1972_s8 + $0x58] sm:$0x1] }
  0xa3   : > { %v574_v30 = vsel %vm2026_vm2, %v569_v22, %v573_v0  ;;  %v583_v33 = vrot.slane %v582_v9, 4  ;;  %v778_v27 = vshll.u32 %v681_v20, 16  ;;  %v783_v5 = vshrl.u32 %v682_v14, 16  ;;  %v1663_v0 = vld [vmem:[%s1972_s8 + $0x5c] sm:$0x1] }
  0xa4   : > { %v603_v36 = vadd.bf16 %v574_v30, %v439_v31  ;;  %v771_v35 = vrot.slane %v769_v16, 4  ;;  %v774_v12 = vrot.slane %v772_v61, 5  ;;  %v786_v38 = vshll.u32 %v682_v14, 16  ;;  %v1648_v31 = vld [vmem:[%s1972_s8 + $0x54] sm:$0xf] }
  0xa5   : > { %v588_v10 = vsel %vm2026_vm2, %v583_v33, %v587_v41  ;;  %v780_v15 = vrot.slane %v778_v27, 5  ;;  %v785_v45 = vrot.slane %v783_v5, 4  ;;  %v792_v40 = vshll.u32 %v683_v29, 16 }
  0xa6   : > { %v604_v43 = vadd.bf16 %v588_v10, %v440_v58  ;;  %v638_v46 = vadd.bf16 %v630_v60, %v603_v36  ;;  %v775_v8 = vor.u32 %v774_v12, %v771_v35  ;;  %v788_v47 = vrot.slane %v786_v38, 5  ;;  %v1649_v12 = vld [vmem:[%s1972_s8 + $0x60] sm:$0xf] }
  0xa7   : > { %v794_v48 = vrot.slane %v792_v40, 5  ;;  %v843_v50 = vmul.bf16 %v2063_v7, %v1614_v59  ;;  %v844_v51 = vmul.bf16 %v2063_v7, %v1639_v39  ;;  %v845_v52 = vmul.bf16 %v2063_v7, %v1615_v23 }
  0xa8   : > { %v639_v53 = vadd.bf16 %v631_v19, %v604_v43  ;;  %v776_v54 = vrot.slane %v775_v8, 4  ;;  %v789_v44 = vor.u32 %v788_v47, %v785_v45  ;;  %v846_v55 = vmul.bf16 %v2063_v7, %v1640_v34  ;;  %v1665_v7 = vld [vmem:[%s1972_s8 + $0x68] sm:$0x1]  ;;  %v1674_v34 = vld [vmem:[%s1972_s8 + $0x64] sm:$0x1]  ;;  %s1773_s8 = sshll.u32 %s1850_s7, 4  ;;  %s1774_s8 = int_to_ptr.vmem [resolvable:$false] %s1773_s8 }
  0xa9   : > { %v932_v26 = vshrl.u32 %v843_v50, 16  ;;  %v935_v56 = vshll.u32 %v843_v50, 16  ;;  %v941_v24 = vshll.u32 %v844_v51, 16  ;;  %v946_v57 = vshrl.u32 %v845_v52, 16  ;;  %s1775_s9 = scalar_lea.vmem %s1774_s8, 2048  ;;  %p1776_p1 = scmp.lt.s32.totalorder %s2416_s17, %s1774_s8 }
  0xaa   : > { %v781_v59 = vsel %vm2026_vm2, %v776_v54, %v780_v15  ;;  %v790_v25 = vrot.slane %v789_v44, 4  ;;  %v949_v32 = vshll.u32 %v845_v52, 16  ;;  %v955_v62 = vshll.u32 %v846_v55, 16  ;;  %p1777_p2 = scmp.lt.s32.totalorder %s1775_s9, %s1769_s29 }
  0xab   : > { %v810_v1 = vadd.bf16 %v781_v59, %v638_v46  ;;  %v934_v3 = vrot.slane %v932_v26, 4  ;;  %v937_v58 = vrot.slane %v935_v56, 5  ;;  %v943_v11 = vrot.slane %v941_v24, 5 }
  0xac   : > { %v795_v4 = vsel %vm2026_vm2, %v790_v25, %v794_v48  ;;  %v948_v23 = vrot.slane %v946_v57, 4  ;;  %v951_v18 = vrot.slane %v949_v32, 5  ;;  %v957_v21 = vrot.slane %v955_v62, 5  ;;  %p1778_p3 = por %p1777_p2, %p1776_p1 }
  0xad   : > { %v811_v60 = vadd.bf16 %v795_v4, %v639_v53  ;;  %v938_v19 = vor.u32 %v937_v58, %v934_v3  ;;  %v1001_v22 = vmul.bf16 %v1648_v31, %v2007_v42  ;;  %v1050_v20 = vmul.bf16 %v2105_v6, %v1662_v37 }
  0xae   : > { %v952_v9 = vor.u32 %v951_v18, %v948_v23  ;;  %v1051_v14 = vmul.bf16 %v2105_v6, %v1663_v0  ;;  %v1052_v41 = vmul.bf16 %v2105_v6, %v1664_v17  ;;  %v1053_v16 = vmul.bf16 %v2105_v6, %v1665_v7  ;;  %p1779_p5 = pnand %p1778_p3, %p1772_p0 }
  0xaf   : > { %v939_v29 = vrot.slane %v938_v19, 4  ;;  %v1214_v61 = vmul.bf16 %v2079_v28, %v1648_v31  ;;  %v1215_v30 = vmul.bf16 %v2079_v28, %v1673_v2  ;;  %v1139_v27 = vshrl.u32 %v1050_v20, 16 }
  0xb0   : > { %v953_v33 = vrot.slane %v952_v9, 4  ;;  %v1142_v5 = vshll.u32 %v1050_v20, 16  ;;  %v1148_v36 = vshll.u32 %v1051_v14, 16  ;;  %v1153_v38 = vshrl.u32 %v1052_v41, 16 }
  0xb1   : > { %v944_v35 = vsel %vm2026_vm2, %v939_v29, %v943_v11  ;;  %v1156_v39 = vshll.u32 %v1052_v41, 16  ;;  %v1162_v10 = vshll.u32 %v1053_v16, 16  ;;  %v1141_v45 = vrot.slane %v1139_v27, 4  ;;  %v1676_v29 = vld [vmem:[%s2473_s4] ss:$0 sm:$0xff] }
  0xb2   : > { %v958_v15 = vsel %vm2026_vm2, %v953_v33, %v957_v21  ;;  %v973_v6 = vadd.bf16 %v944_v35, %v810_v1  ;;  %v1144_v40 = vrot.slane %v1142_v5, 5  ;;  %v1002_v46 = vmul.bf16 %v1649_v12, %v2007_v42 }
  0xb3   : > { %v974_v43 = vadd.bf16 %v958_v15, %v811_v60  ;;  %v1155_v8 = vrot.slane %v1153_v38, 4  ;;  %v1158_v47 = vrot.slane %v1156_v39, 5  ;;  %v1150_v51 = vrot.slane %v1148_v36, 5 }
  0xb4   : > { %v1009_v48 = vadd.bf16 %v1001_v22, %v973_v6  ;;  %v1145_v50 = vor.u32 %v1144_v40, %v1141_v45  ;;  %v1216_v52 = vmul.bf16 %v2079_v28, %v1649_v12  ;;  %v1164_v54 = vrot.slane %v1162_v10, 5 }
  0xb5   : > { %v1159_v53 = vor.u32 %v1158_v47, %v1155_v8  ;;  %v1217_v44 = vmul.bf16 %v2079_v28, %v1674_v34  ;;  %v1303_v55 = vshrl.u32 %v1214_v61, 16  ;;  %v1306_v56 = vshll.u32 %v1214_v61, 16 }
  0xb6   : > { %v1146_v26 = vrot.slane %v1145_v50, 4  ;;  %v1312_v24 = vshll.u32 %v1215_v30, 16  ;;  %v1317_v57 = vshrl.u32 %v1216_v52, 16  ;;  %v1320_v25 = vshll.u32 %v1216_v52, 16 }
  0xb7   : > { %v1160_v37 = vrot.slane %v1159_v53, 4  ;;  %v1305_v59 = vrot.slane %v1303_v55, 4  ;;  %v1326_v42 = vshll.u32 %v1217_v44, 16  ;;  %v1010_v32 = vadd.bf16 %v1002_v46, %v974_v43 }
  0xb8   : > { %v1151_v62 = vsel %vm2026_vm2, %v1146_v26, %v1150_v51  ;;  %v1308_v31 = vrot.slane %v1306_v56, 5  ;;  %v1319_v0 = vrot.slane %v1317_v57, 4  ;;  %v1322_v3 = vrot.slane %v1320_v25, 5 }
  0xb9   : > { %v1165_v1 = vsel %vm2026_vm2, %v1160_v37, %v1164_v54  ;;  %v1314_v58 = vrot.slane %v1312_v24, 5  ;;  %v1180_v17 = vadd.bf16 %v1151_v62, %v1009_v48  ;;  %v1328_v4 = vrot.slane %v1326_v42, 5 }
  0xba   : > { %v1309_v28 = vor.u32 %v1308_v31, %v1305_v59  ;;  %v1323_v7 = vor.u32 %v1322_v3, %v1319_v0  ;;  %v1181_v11 = vadd.bf16 %v1165_v1, %v1010_v32 }
  0xbc   : > { %v1310_v23 = vrot.slane %v1309_v28, 4  ;;  %v1324_v18 = vrot.slane %v1323_v7, 4 }
  0xbe   : > { %v1315_v2 = vsel %vm2026_vm2, %v1310_v23, %v1314_v58  ;;  %v1329_v60 = vsel %vm2026_vm2, %v1324_v18, %v1328_v4 }
  0xbf   : > { %v1344_v19 = vadd.bf16 %v1315_v2, %v1180_v17  ;;  %v1345_v21 = vadd.bf16 %v1329_v60, %v1181_v11 }
  0xc1   : > { %v1360_v22 = vadd.bf16 %v2137_v63, %v1344_v19  ;;  %v1361_v9 = vadd.bf16 %v2137_v63, %v1345_v21 }
  0xc3   : > { %v1368_v20 = vmax.bf16 %v1849_v49, %v1360_v22  ;;  %v1369_v14 = vmax.bf16 %v1849_v49, %v1361_v9 }
  0xc5   : > { %v1680_v41 = vcombine.low %v1368_v20, %v1369_v14 }
  0xc7   : > { %1704 = vmatmul.mubr.msk.bf16.vlgmr.msra.gmra.mrb[0].mxu1 %vm1405_vm3, %v1680_v41 }
 0x173   : > { %v1701_v13 = vpop.f32.mrb[0].mxu0 }
 0x174   : > { %v1461_v16 = vadd.f32 %v1701_v13, %v1676_v29  ;;  %v1452_v61 = vpop.f32.mrb[1].mxu0 }
 0x175   : > { %v1453_v30 = vadd.f32 %v1676_v29, %v1452_v61  ;;  %v1702_v63 = vpop.f32.mrb[2].mxu0 }
 0x176   : > { %v1485_v33 = vmax.f32 %v1461_v16, 0.0  ;;  %v1464_v27 = vadd.f32 %v1702_v63, %v1676_v29  ;;  %v1455_v49 = vpop.f32.mrb[3].mxu0 }
 0x177   : > { %v1483_v5 = vmax.f32 %v1453_v30, 0.0  ;;  %v1456_v36 = vadd.f32 %v1676_v29, %v1455_v49 }
 0x178   : > { %1494 = vst.msk [vmem:[%s231_s15 + $0x10] sm:$0xff] %vm1491_vm4, %v1485_v33  ;;  %v1486_v35 = vmax.f32 %v1464_v27, 0.0 }
 0x179   : > { %1492 = vst.msk [vmem:[%s231_s15] sm:$0xff] %vm1491_vm4, %v1483_v5  ;;  %v1484_v12 = vmax.f32 %v1456_v36, 0.0 }
 0x17a   : > { %1495 = vst.msk [vmem:[%s231_s15 + $0x18] sm:$0xff] %vm1491_vm4, %v1486_v35 }
 0x17b   : > { %1493 = vst.msk [vmem:[%s231_s15 + $0x8] sm:$0xff] %vm1491_vm4, %v1484_v12 }
 0x19a   : > { %v1705_v38 = vpop.f32.mrb[0].mxu1 }
 0x19b   : > { %v1477_v39 = vadd.f32 %v1705_v38, %v1676_v29  ;;  %v1468_v10 = vpop.f32.mrb[1].mxu1 }
 0x19c   : > { %v1469_v15 = vadd.f32 %v1676_v29, %v1468_v10  ;;  %v1706_v6 = vpop.f32.mrb[2].mxu1 }
 0x19d   : > { %v1489_v45 = vmax.f32 %v1477_v39, 0.0  ;;  %v1480_v40 = vadd.f32 %v1706_v6, %v1676_v29  ;;  %v1471_v34 = vpop.f32.mrb[3].mxu1 }
 0x19e   : > { %v1487_v43 = vmax.f32 %v1469_v15, 0.0  ;;  %v1472_v46 = vadd.f32 %v1676_v29, %v1471_v34 }
 0x19f   : > { %1498 = vst.msk [vmem:[%s231_s15 + $0x30] sm:$0xff] %vm1491_vm4, %v1489_v45  ;;  %v1490_v8 = vmax.f32 %v1480_v40, 0.0 }
 0x1a0   : > { %1496 = vst.msk [vmem:[%s231_s15 + $0x20] sm:$0xff] %vm1491_vm4, %v1487_v43  ;;  %v1488_v47 = vmax.f32 %v1472_v46, 0.0 }
 0x1a1   : > { %1499 = vst.msk [vmem:[%s231_s15 + $0x38] sm:$0xff] %vm1491_vm4, %v1490_v8 }
 0x1a2   : > { %1497 = vst.msk [vmem:[%s231_s15 + $0x28] sm:$0xff] %vm1491_vm4, %v1488_v47 }
 0x1a3   : > { %1782 = shalt.err (!%p1779_p5)
}
 0x1a4   : > { %s1783_s10 = scalar_lea.hbm %s2414_s27, 1024  ;;  %s1787_s13 = scalar_lea.hbm %s2474_s5, 2048 }
 0x1a5   : > { %p1784_p6 = scmp.ne.s32.totalorder %s2414_s27, %s1783_s10  ;;  %p1788_p10 = scmp.lt.u32.totalorder %s2414_s27, %s2474_s5 }
 0x1a6   : > { %p1789_p11 = scmp.lt.u32.totalorder %s1787_s13, %s1783_s10  ;;  %p1791_p13 = scmp.lt.u32.totalorder %s1783_s10, %s2414_s27 }
 0x1a7   : > { %p1785_p7 = pnand %p1784_p6, %p1923_p4 }
 0x1a8   : > { %p1790_p12 = por %p1789_p11, %p1788_p10 }
 0x1a9   : > { %p1786_p9 = pneg %p1785_p7 }
 0x1aa   : > { %p1792_p0 = por %p1791_p13, %p1790_p12 }
 0x1ac   : > { %p1793_p1 = pnand %p1792_p0, %p1786_p9 }
 0x1ae   : > { %1796 = shalt.err (!%p1793_p1)
}
 0x1af   : > { %s1851_s16 = smov 128   ;;  %s1852_s24 = smov 8  }
 0x1b0   : > { %1710 = dma.vmem_to_hbm [thread:$0]  (%p1923_p4), %s2416_s17, 1024, %s2414_s27, %s2423_s21, %s1851_s16, %s1851_s16, %s1852_s24  }
 0x1b1 PF: > { %p1716_p2 = scmp.ge.s32.totalorder %s1847_s23, 2  ;;  %s1531_s25 = sand.u32 1, %s1827_s18  }
 0x1b2   : > { %s1532_s29 = scalar_lea.sflag [#allocation3], %s1531_s25 }
 0x1b3   : > { %p1713_p3 = pnand %p1716_p2, %p1930_p8 }
 0x1b5   : > { %1822 = dma.done.wait (!%p1713_p3), %s1532_s29, 1024  }
 0x1b6   : > { %1824 = vsyncadd (!%p1713_p3), %s1532_s29, 4294966272  ;;  %s18_s23 = sadd.s32 1, %s1847_s23   ;;  %s2479_s18 = smov %s1831_s19 }
 0x1b7   : > { %p15_p5 = scmp.ge.s32.totalorder %s18_s23, 4   ;;  %s2480_s19 = smov %s1835_s20 }
 0x1b8   : > { %s2481_s20 = smov %s1936_s6  ;;  %s2482_s21 = smov %s1843_s22 }
 0x1b9   : > { %s2483_s22 = smov %s2485_s26  ;;  %17 = sbr.rel (!%p15_p5) target bundleno = 4 (0x4), region = 78 }
 0x1c0   :  { %1537 = vsyncpa [#allocation3], 1 }
 0x1c1   :  { %1539 = vsyncpa [#allocation3 + $0x1], 1 }

</bundles_post_ra>
